<compile_context>
chip_gen: v5e
topology: v5e:2x2
jax: 0.10.0
libtpu: 0.0.40
codegen_flags: <defaults>
</compile_context>

<pallas_src>
import functools

import numpy as np
import jax
import jax.numpy as jnp
from jax import lax
from jax.experimental import pallas as pl
from jax.experimental.pallas import tpu as pltpu


def _round_up(x, m):
    return (x + m - 1) // m * m


# ---------------------------------------------------------------------------
# Fused kernel: encoder GEMM+ReLU -> single fused K=128 transposed-conv GEMM
# + Sigmoid.  The latent z stays in VMEM scratch (bf16) for the whole step.
# ---------------------------------------------------------------------------
def _fused_autoencoder_kernel(p_ref, w1_ref, b1_ref, w2_ref, b2_ref,
                              o_ref, z_ref, *, m_dec, tap_offsets):
    # ----- encoder: z = relu(P @ W1 + b1), kept in VMEM as bf16 -------------
    z = jnp.dot(p_ref[...], w1_ref[...], preferred_element_type=jnp.float32)
    z_ref[...] = jnp.maximum(z + b1_ref[...], 0.0).astype(jnp.bfloat16)

    # ----- decoder: ConvTranspose3d as ONE (m_dec,128)x(128,24) matmul ------
    # z_cat[r, t*16:(t+1)*16] = z[r + off_t, :]   (8 taps, lane-dim concat)
    z_cat = jnp.concatenate(
        [z_ref[off:off + m_dec, :] for off in tap_offsets], axis=-1)
    acc = jnp.dot(z_cat, w2_ref[...], preferred_element_type=jnp.float32)
    acc = acc + b2_ref[...]
    # sigmoid = 1 / (1 + exp(-x)): exp on the EUP + approximate reciprocal.
    o_ref[...] = pl.reciprocal(1.0 + jnp.exp(-acc), approx=True).astype(o_ref.dtype)


# ---------------------------------------------------------------------------
# Forward pass (matches VideoAutoencoder.forward semantics)
# ---------------------------------------------------------------------------
def video_autoencoder_forward(params, x, epoch=0, *, depth_tiles=2):
    del epoch                                      # unused, as in the module
    N, Cin, D, H, W = x.shape
    assert Cin == 3

    w1 = params["enc_w"]   # (16, 3, 3, 3, 3)  (Cout, Cin, kD, kH, kW)
    b1 = params["enc_b"]   # (16,)
    wt = params["dec_w"]   # (16, 3, 3, 3, 3)  (Cin, Cout, kD, kH, kW)
    bt = params["dec_b"]   # (3,)

    # ---- geometry -----------------------------------------------------------
    Do = (D + 4 - 3) // 2 + 1                      # latent dims (Conv3d k3 s2 p2)
    Ho = (H + 4 - 3) // 2 + 1
    Wo = (W + 4 - 3) // 2 + 1
    Dd, Hd, Wd = 2 * Do - 2, 2 * Ho - 2, 2 * Wo - 2  # decoder output dims
    Dv, Hv, Wv = Do - 1, Ho - 1, Wo - 1              # valid latent anchor positions
    HWo = Ho * Wo

    # ---- depth tiling (second parallel grid axis) ---------------------------
    DT = max(1, min(depth_tiles, Dv))
    td = -(-Dv // DT)                              # latent depth anchors per tile
    DT = -(-Dv // td)
    rows_dec = td * HWo                            # decoder rows per tile
    M2 = _round_up(rows_dec, 8)
    halo = HWo + Wo + 1                            # largest tap offset (+1,+1,+1)
    rows_enc = (td + 1) * HWo                      # encoder rows used per tile
    M1 = _round_up(M2 + halo, 8)                   # z scratch rows (incl. halo pad)
    # NOTE: z rows past rows_enc come from zero patch rows -> relu(b1); they are
    # only read by output rows the wrapper discards (w=Wo-1 / h=Ho-1 / d>=Dv).

    # ---- encoder im2col: one p materialization, column = tap*3 + cin --------
    xb = jnp.transpose(x, (0, 2, 3, 4, 1)).astype(jnp.bfloat16)      # NDHWC
    xp = jnp.pad(xb, ((0, 0), (2, 2), (2, 2), (2, 2), (0, 0)))
    taps = [xp[:, kd:kd + 2 * Do - 1:2,
               kh:kh + 2 * Ho - 1:2,
               kw:kw + 2 * Wo - 1:2, :]
            for kd in range(3) for kh in range(3) for kw in range(3)]
    p_full = jnp.concatenate(taps, axis=-1)                          # (N,Do,Ho,Wo,81)

    # pad latent depth so every tile can take a (td+1)-slice window
    need_d = DT * td + 1
    if need_d > Do:
        p_full = jnp.pad(p_full, ((0, 0), (0, need_d - Do), (0, 0), (0, 0), (0, 0)))

    # per-tile depth windows (1-slice halo duplicated at tile boundaries)
    p_t = jnp.stack([p_full[:, t * td:t * td + td + 1] for t in range(DT)], axis=1)
    p_t = p_t.reshape(N, DT, rows_enc, 27 * Cin)
    p_t = jnp.pad(p_t, ((0, 0), (0, 0), (0, M1 - rows_enc), (0, 0)))

    # ---- weight matrices -----------------------------------------------------
    w1_mat = jnp.transpose(w1, (2, 3, 4, 1, 0)).reshape(27 * Cin, 16)
    w1_mat = w1_mat.astype(jnp.bfloat16)
    b1_row = b1.astype(jnp.float32).reshape(1, 16)

    # Phase/tap selector A[p, d, k]: output phase p uses latent offset d with
    # kernel index k, for ConvTranspose3d(k=3,s=2,p=2,op=1):  k = p + 2 - 2d.
    A = np.zeros((2, 2, 3), np.float32)
    A[0, 0, 2] = 1.0
    A[0, 1, 0] = 1.0
    A[1, 1, 1] = 1.0
    A = jnp.asarray(A)
    w2 = jnp.einsum('icabe,pda,qfb,rge->dfgipqrc',
                    wt.astype(jnp.float32), A, A, A)
    w2_mat = w2.reshape(8 * 16, 24).astype(jnp.bfloat16)      # K = 128 fused
    b2_row = jnp.tile(bt.astype(jnp.float32), 8).reshape(1, 24)

    tap_offsets = tuple(dd * HWo + dh * Wo + dw
                        for dd in (0, 1) for dh in (0, 1) for dw in (0, 1))

    # ---- fused pallas_call ---------------------------------------------------
    kernel = functools.partial(_fused_autoencoder_kernel,
                               m_dec=M2, tap_offsets=tap_offsets)
    out_t = pl.pallas_call(
        kernel,
        out_shape=jax.ShapeDtypeStruct((N, DT, M2, 24), jnp.bfloat16),
        grid_spec=pltpu.PrefetchScalarGridSpec(
            num_scalar_prefetch=0,
            grid=(N, DT),
            in_specs=[
                pl.BlockSpec((None, None, M1, 27 * Cin), lambda n, t: (n, t, 0, 0)),
                pl.BlockSpec((27 * Cin, 16), lambda n, t: (0, 0)),
                pl.BlockSpec((1, 16), lambda n, t: (0, 0)),
                pl.BlockSpec((128, 24), lambda n, t: (0, 0)),
                pl.BlockSpec((1, 24), lambda n, t: (0, 0)),
            ],
            out_specs=pl.BlockSpec((None, None, M2, 24), lambda n, t: (n, t, 0, 0)),
            scratch_shapes=[pltpu.VMEM((M1, 16), jnp.bfloat16)],
        ),
        compiler_params=pltpu.CompilerParams(
            dimension_semantics=("parallel", "parallel"),
            vmem_limit_bytes=32 * 1024 * 1024),
    )(p_t, w1_mat, b1_row, w2_mat, b2_row)

    # ---- un-interleave the 8 sub-pixel phases (bf16 layout plumbing) --------
    o = out_t[:, :, :rows_dec, :].reshape(N, DT * td, Ho, Wo, 2, 2, 2, 3)
    o = o[:, :Dv, :Hv, :Wv]                         # drop halo/invalid rows
    o = jnp.transpose(o, (0, 1, 4, 2, 5, 3, 6, 7))  # (n, md,pd, mh,ph, mw,pw, c)
    o = o.reshape(N, Dd, Hd, Wd, 3)
    out = jnp.transpose(o, (0, 4, 1, 2, 3)).astype(jnp.float32)   # NCDHW

    # forward() returns (out, None, 0, 0, 0)
    return out, None, 0, 0, 0


# ---------------------------------------------------------------------------
# Deterministic parameter init (shapes from the module's __init__)
# ---------------------------------------------------------------------------
def init_params(key):
    k1, k2, k3, k4 = jax.random.split(key, 4)
    enc_fan_in = 3 * 27
    dec_fan_in = 16 * 27
    return {
        "enc_w": jax.random.normal(k1, (16, 3, 3, 3, 3), jnp.float32)
                 * (1.0 / jnp.sqrt(enc_fan_in)),
        "enc_b": jax.random.normal(k2, (16,), jnp.float32) * 0.01,
        "dec_w": jax.random.normal(k3, (16, 3, 3, 3, 3), jnp.float32)
                 * (1.0 / jnp.sqrt(dec_fan_in)),
        "dec_b": jax.random.normal(k4, (3,), jnp.float32) * 0.01,
    }


def _reference_forward(params, x):
    # Pure-XLA reference (operands pre-quantized to bf16 to mirror the kernel).
    q = lambda a: a.astype(jnp.bfloat16).astype(jnp.float32)
    xq = q(x)
    w1, b1 = q(params["enc_w"]), params["enc_b"].astype(jnp.float32)
    wt, bt = q(params["dec_w"]), params["dec_b"].astype(jnp.float32)
    z = lax.conv_general_dilated(
        xq, w1, window_strides=(2, 2, 2), padding=[(2, 2)] * 3,
        dimension_numbers=("NCDHW", "OIDHW", "NCDHW"))
    z = jnp.maximum(z + b1.reshape(1, -1, 1, 1, 1), 0.0)
    z = q(z)   # kernel keeps the latent as bf16 in VMEM scratch
    # ConvTranspose3d(k=3,s=2,p=2,op=1) == dilated conv with flipped kernel.
    wt_conv = jnp.transpose(jnp.flip(wt, axis=(2, 3, 4)), (1, 0, 2, 3, 4))
    out = lax.conv_general_dilated(
        z, wt_conv, window_strides=(1, 1, 1), padding=[(0, 1)] * 3,
        lhs_dilation=(2, 2, 2),
        dimension_numbers=("NCDHW", "OIDHW", "NCDHW"))
    return jax.nn.sigmoid(out + bt.reshape(1, -1, 1, 1, 1))


if __name__ == "__main__":
    key = jax.random.PRNGKey(0)
    pkey, xkey = jax.random.split(key)
    params = init_params(pkey)

    fwd = jax.jit(functools.partial(video_autoencoder_forward, params))
    ref_fn = jax.jit(functools.partial(_reference_forward, params))

    # Test 1: even dims (N=2, C=3, D=8, H=16, W=16)
    x = jax.random.normal(xkey, (2, 3, 8, 16, 16), jnp.float32)
    out, aux, a, b, c = fwd(x, 0)
    out = jax.block_until_ready(out)
    assert out.shape == (2, 3, 8, 16, 16), out.shape
    assert aux is None and int(a) == 0 and int(b) == 0 and int(c) == 0
    err = float(jnp.max(jnp.abs(out - ref_fn(x))))
    assert err < 5e-2, f"max abs error vs reference (test 1): {err}"

    # Test 2: uneven dims exercising depth-tile padding / partial last tile.
    x2 = jax.random.normal(jax.random.PRNGKey(1), (1, 3, 6, 10, 12), jnp.float32)
    out2 = jax.block_until_ready(fwd(x2, 0)[0])
    assert out2.shape == (1, 3, 6, 10, 12), out2.shape
    err2 = float(jnp.max(jnp.abs(out2 - ref_fn(x2))))
    assert err2 < 5e-2, f"max abs error vs reference (test 2): {err2}"

    print("KERNEL_OK")
</pallas_src>

<mosaic_0001>
module attributes {stable_mosaic.version = 11 : i64} {
  func.func @_fused_autoencoder_kernel(%arg0: i32, %arg1: i32, %arg2: memref<1x1x264x81xbf16, #tpu.memory_space<vmem>>, %arg3: memref<81x16xbf16, #tpu.memory_space<vmem>>, %arg4: memref<1x16xf32, #tpu.memory_space<vmem>>, %arg5: memref<128x24xbf16, #tpu.memory_space<vmem>>, %arg6: memref<1x24xf32, #tpu.memory_space<vmem>>, %arg7: memref<1x1x168x24xbf16, #tpu.memory_space<vmem>>, %arg8: memref<264x16xbf16, #tpu.memory_space<vmem>>) attributes {dimension_semantics = [#tpu.dimension_semantics<parallel>, #tpu.dimension_semantics<parallel>], iteration_bounds = array<i64: 2, 2>, scalar_prefetch = 0 : i64, scratch_operands = 1 : i64, tpu.core_type = #tpu.core_type<tc>, window_params = [{transform_indices = @transform_0, window_bounds = array<i64: 1, 1, 264, 81>}, {pipeline_mode = #tpu.pipeline_mode<synchronous>, transform_indices = @transform_1, window_bounds = array<i64: 81, 16>}, {pipeline_mode = #tpu.pipeline_mode<synchronous>, transform_indices = @transform_2, window_bounds = array<i64: 1, 16>}, {pipeline_mode = #tpu.pipeline_mode<synchronous>, transform_indices = @transform_3, window_bounds = array<i64: 128, 24>}, {pipeline_mode = #tpu.pipeline_mode<synchronous>, transform_indices = @transform_4, window_bounds = array<i64: 1, 24>}, {transform_indices = @transform_5, window_bounds = array<i64: 1, 1, 168, 24>}]} {
    %c0 = arith.constant 0 : index
    %c0_0 = arith.constant 0 : index
    %c0_1 = arith.constant 0 : index
    %c0_2 = arith.constant 0 : index
    %0 = vector.load %arg2[%c0, %c0_0, %c0_1, %c0_2] : memref<1x1x264x81xbf16, #tpu.memory_space<vmem>>, vector<1x1x264x81xbf16>
    %1 = vector.shape_cast %0 : vector<1x1x264x81xbf16> to vector<264x81xbf16>
    %c0_3 = arith.constant 0 : index
    %c0_4 = arith.constant 0 : index
    %2 = vector.load %arg3[%c0_3, %c0_4] : memref<81x16xbf16, #tpu.memory_space<vmem>>, vector<81x16xbf16>
    %cst = arith.constant dense<0.000000e+00> : vector<264x16xf32>
    %3 = tpu.matmul %1, %2, %cst {dimension_numbers = #tpu.dot_dimension_numbers<[1], [0], [0], [1], [0, 0, 1, 1], [], []>} : vector<264x81xbf16>, vector<81x16xbf16>, vector<264x16xf32> -> vector<264x16xf32>
    %c0_5 = arith.constant 0 : index
    %c0_6 = arith.constant 0 : index
    %4 = vector.load %arg4[%c0_5, %c0_6] : memref<1x16xf32, #tpu.memory_space<vmem>>, vector<1x16xf32>
    %5 = vector.broadcast %4 : vector<1x16xf32> to vector<264x16xf32>
    %6 = arith.addf %3, %5 : vector<264x16xf32>
    %cst_7 = arith.constant 0.000000e+00 : f32
    %7 = vector.broadcast %cst_7 : f32 to vector<264x16xf32>
    %8 = arith.maximumf %6, %7 : vector<264x16xf32>
    %9 = arith.truncf %8 : vector<264x16xf32> to vector<264x16xbf16>
    %c0_8 = arith.constant 0 : index
    %c0_9 = arith.constant 0 : index
    %10 = vector.load %arg8[%c0_8, %c0_9] : memref<264x16xbf16, #tpu.memory_space<vmem>>, vector<264x16xbf16>
    tpu.vector_store %arg8[%c0_8, %c0_9], %9 {strides = array<i32>} : memref<264x16xbf16, #tpu.memory_space<vmem>>, vector<264x16xbf16>,
    %c0_10 = arith.constant 0 : index
    %c0_11 = arith.constant 0 : index
    %11 = vector.load %arg8[%c0_10, %c0_11] : memref<264x16xbf16, #tpu.memory_space<vmem>>, vector<168x16xbf16>
    %c1 = arith.constant 1 : index
    %c0_12 = arith.constant 0 : index
    %12 = vector.load %arg8[%c1, %c0_12] : memref<264x16xbf16, #tpu.memory_space<vmem>>, vector<168x16xbf16>
    %c9 = arith.constant 9 : index
    %c0_13 = arith.constant 0 : index
    %13 = vector.load %arg8[%c9, %c0_13] : memref<264x16xbf16, #tpu.memory_space<vmem>>, vector<168x16xbf16>
    %c10 = arith.constant 10 : index
    %c0_14 = arith.constant 0 : index
    %14 = vector.load %arg8[%c10, %c0_14] : memref<264x16xbf16, #tpu.memory_space<vmem>>, vector<168x16xbf16>
    %c81 = arith.constant 81 : index
    %c0_15 = arith.constant 0 : index
    %15 = vector.load %arg8[%c81, %c0_15] : memref<264x16xbf16, #tpu.memory_space<vmem>>, vector<168x16xbf16>
    %c82 = arith.constant 82 : index
    %c0_16 = arith.constant 0 : index
    %16 = vector.load %arg8[%c82, %c0_16] : memref<264x16xbf16, #tpu.memory_space<vmem>>, vector<168x16xbf16>
    %c90 = arith.constant 90 : index
    %c0_17 = arith.constant 0 : index
    %17 = vector.load %arg8[%c90, %c0_17] : memref<264x16xbf16, #tpu.memory_space<vmem>>, vector<168x16xbf16>
    %c91 = arith.constant 91 : index
    %c0_18 = arith.constant 0 : index
    %18 = vector.load %arg8[%c91, %c0_18] : memref<264x16xbf16, #tpu.memory_space<vmem>>, vector<168x16xbf16>
    %19 = tpu.concatenate %11, %12, %13, %14, %15, %16, %17, %18 in 1 : vector<168x16xbf16>, vector<168x16xbf16>, vector<168x16xbf16>, vector<168x16xbf16>, vector<168x16xbf16>, vector<168x16xbf16>, vector<168x16xbf16>, vector<168x16xbf16> -> vector<168x128xbf16>
    %c0_19 = arith.constant 0 : index
    %c0_20 = arith.constant 0 : index
    %20 = vector.load %arg5[%c0_19, %c0_20] : memref<128x24xbf16, #tpu.memory_space<vmem>>, vector<128x24xbf16>
    %cst_21 = arith.constant dense<0.000000e+00> : vector<168x24xf32>
    %21 = tpu.matmul %19, %20, %cst_21 {dimension_numbers = #tpu.dot_dimension_numbers<[1], [0], [0], [1], [0, 0, 1, 1], [], []>} : vector<168x128xbf16>, vector<128x24xbf16>, vector<168x24xf32> -> vector<168x24xf32>
    %c0_22 = arith.constant 0 : index
    %c0_23 = arith.constant 0 : index
    %22 = vector.load %arg6[%c0_22, %c0_23] : memref<1x24xf32, #tpu.memory_space<vmem>>, vector<1x24xf32>
    %23 = vector.broadcast %22 : vector<1x24xf32> to vector<168x24xf32>
    %24 = arith.addf %21, %23 : vector<168x24xf32>
    %cst_24 = arith.constant 0.000000e+00 : f32
    %25 = vector.broadcast %cst_24 : f32 to vector<168x24xf32>
    %26 = arith.subf %25, %24 : vector<168x24xf32>
    %27 = math.exp %26 : vector<168x24xf32>
    %cst_25 = arith.constant 1.000000e+00 : f32
    %28 = vector.broadcast %cst_25 : f32 to vector<168x24xf32>
    %29 = arith.addf %28, %27 : vector<168x24xf32>
    %30 = tpu.reciprocal %29 {approx = true} : vector<168x24xf32> -> vector<168x24xf32>
    %31 = arith.truncf %30 : vector<168x24xf32> to vector<168x24xbf16>
    %c0_26 = arith.constant 0 : index
    %c0_27 = arith.constant 0 : index
    %c0_28 = arith.constant 0 : index
    %c0_29 = arith.constant 0 : index
    %32 = vector.load %arg7[%c0_26, %c0_27, %c0_28, %c0_29] : memref<1x1x168x24xbf16, #tpu.memory_space<vmem>>, vector<1x1x168x24xbf16>
    %33 = vector.shape_cast %32 : vector<1x1x168x24xbf16> to vector<168x24xbf16>
    %34 = vector.shape_cast %31 : vector<168x24xbf16> to vector<1x1x168x24xbf16>
    tpu.vector_store %arg7[%c0_26, %c0_27, %c0_28, %c0_29], %34 {strides = array<i32>} : memref<1x1x168x24xbf16, #tpu.memory_space<vmem>>, vector<1x1x168x24xbf16>,
    return
  }
  func.func @transform_0(%arg0: i32, %arg1: i32) -> (i32, i32, i32, i32) {
    %c0_i32 = arith.constant 0 : i32
    %c0_i32_0 = arith.constant 0 : i32
    %c0_i32_1 = arith.constant 0 : i32
    return %arg0, %arg1, %c0_i32, %c0_i32_0 : i32, i32, i32, i32
  }
  func.func @transform_1(%arg0: i32, %arg1: i32) -> (i32, i32) {
    %c0_i32 = arith.constant 0 : i32
    %c0_i32_0 = arith.constant 0 : i32
    %c0_i32_1 = arith.constant 0 : i32
    return %c0_i32, %c0_i32_0 : i32, i32
  }
  func.func @transform_2(%arg0: i32, %arg1: i32) -> (i32, i32) {
    %c0_i32 = arith.constant 0 : i32
    %c0_i32_0 = arith.constant 0 : i32
    %c0_i32_1 = arith.constant 0 : i32
    return %c0_i32, %c0_i32_0 : i32, i32
  }
  func.func @transform_3(%arg0: i32, %arg1: i32) -> (i32, i32) {
    %c0_i32 = arith.constant 0 : i32
    %c0_i32_0 = arith.constant 0 : i32
    %c0_i32_1 = arith.constant 0 : i32
    return %c0_i32, %c0_i32_0 : i32, i32
  }
  func.func @transform_4(%arg0: i32, %arg1: i32) -> (i32, i32) {
    %c0_i32 = arith.constant 0 : i32
    %c0_i32_0 = arith.constant 0 : i32
    %c0_i32_1 = arith.constant 0 : i32
    return %c0_i32, %c0_i32_0 : i32, i32
  }
  func.func @transform_5(%arg0: i32, %arg1: i32) -> (i32, i32, i32, i32) {
    %c0_i32 = arith.constant 0 : i32
    %c0_i32_0 = arith.constant 0 : i32
    %c0_i32_1 = arith.constant 0 : i32
    return %arg0, %arg1, %c0_i32, %c0_i32_0 : i32, i32, i32, i32
  }
}

</mosaic_0001>

<bundles_post_ra>
// kernel: tile.6
= control target key start
LH: loop header
LB: loop body
LE: loop exit
PB: predicated region body
PF: predicated region fallthrough
CT: control target
= control target key end

     0   :  { %s22_s0 = inlined_call_operand.vmem [shape: f32[3], index: 0, kind: input, shape index: {}]   ;;  %s23_s1 = inlined_call_operand.vmem [shape: f32[8,3], index: 1, kind: output, shape index: {}]  }
   0x1   :  { %v4_v0 = vld [vmem:[%s22_s0] ss:$0 sm:$0xff] }
   0x2   :  { %5 = vst [vmem:[%s23_s1] sm:$0xff] %v4_v0 }

// kernel: tile.7
= control target key start
LH: loop header
LB: loop body
LE: loop exit
PB: predicated region body
PF: predicated region fallthrough
CT: control target
= control target key end

     0   :  { %s67_s10 = smov 21   ;;  %s68_s11 = smov 15   ;;  %vm3_vm0 = vcmask 23552   ;;  %vm9_vm1 = vcmask 195752   ;;  %vm15_vm2 = vcmask 171152   ;;  %vm21_vm3 = vcmask 146552   ;;  %s111_s0 = inlined_call_operand.vmem [shape: f32[8,3], index: 0, kind: input, shape index: {}]   ;;  %s112_s1 = inlined_call_operand.vmem [shape: f32[1,24], index: 1, kind: output, shape index: {}]  }
   0x1   :  { %v53_v0 = vld [vmem:[%s111_s0 + $0x7] sm:$0x1]   ;;  %v55_v1 = vld [vmem:[%s111_s0 + $0x5] sm:$0x1]   ;;  %v57_v2 = vld [vmem:[%s111_s0 + $0x3] sm:$0x1]  }
   0x2   :  { %7 = vrot.lane.b32.xlu0 %v53_v0, %s67_s10  ;;  %19 = vrot.lane.b32.xlu1 %v55_v1, %s68_s11  ;;  %s69_s14 = smov 9   ;;  %v54_v3 = vld [vmem:[%s111_s0 + $0x6] sm:$0x1]   ;;  %v56_v4 = vld [vmem:[%s111_s0 + $0x4] sm:$0x1]   ;;  %s70_s21 = smov 18  }
   0x3   :  { %31 = vrot.lane.b32.xlu2 %v57_v2, %s69_s14  ;;  %v58_v5 = vld [vmem:[%s111_s0 + $0x2] sm:$0x1]   ;;  %s71_s22 = smov 12   ;;  %s72_s23 = smov 6   ;;  %v59_v6 = vld [vmem:[%s111_s0 + $0x1] sm:$0x1]  }
   0x4   :  { %s73_s26 = smov 3   ;;  %v2_v7 = vld [vmem:[%s111_s0] sm:$0x1]   ;;  %vm27_vm4 = vcmask 121952   ;;  %vm33_vm5 = vcmask 97352   ;;  %vm39_vm6 = vcmask 72752  }
   0x5   :  { %4 = vst.msk [vmem:[#allocation0] sm:$0x1] %vm3_vm0, %v2_v7   ;;  %vm45_vm7 = vcmask 48152  }
   0xa   :  { %13 = vrot.lane.b32.xlu0 %v54_v3, %s70_s21  ;;  %25 = vrot.lane.b32.xlu1 %v56_v4, %s71_s22 }
   0xb   :  { %37 = vrot.lane.b32.xlu2 %v58_v5, %s72_s23 }
  0x12   :  { %43 = vrot.lane.b32.xlu0 %v59_v6, %s73_s26 }
  0x5d   :  { %v32_v8 = vpop.permute.xlu2 %31  }
  0x65   :  { %v38_v9 = vpop.permute.xlu2 %37  }
  0x74   :  { %v8_v10 = vpop.permute.xlu0 %7   ;;  %v20_v11 = vpop.permute.xlu1 %19  }
  0x75   :  { %10 = vst.msk [vmem:[#allocation0] sm:$0x1] %vm9_vm1, %v8_v10  }
  0x7c   :  { %v14_v12 = vpop.permute.xlu0 %13   ;;  %v26_v13 = vpop.permute.xlu1 %25  }
  0x7d   :  { %16 = vst.msk [vmem:[#allocation0] sm:$0x1] %vm15_vm2, %v14_v12  }
  0x7e   :  { %22 = vst.msk [vmem:[#allocation0] sm:$0x1] %vm21_vm3, %v20_v11  }
  0x7f   :  { %28 = vst.msk [vmem:[#allocation0] sm:$0x1] %vm27_vm4, %v26_v13  }
  0x80   :  { %34 = vst.msk [vmem:[#allocation0] sm:$0x1] %vm33_vm5, %v32_v8  }
  0x81   :  { %40 = vst.msk [vmem:[#allocation0] sm:$0x1] %vm39_vm6, %v38_v9  }
  0x84   :  { %v44_v14 = vpop.permute.xlu0 %43  }
  0x85   :  { %46 = vst.msk [vmem:[#allocation0] sm:$0x1] %vm45_vm7, %v44_v14  }
  0x8c   :  { %v49_v15 = vld [vmem:[#allocation0] sm:$0x1] }
  0x8d   :  { %52 = vst [vmem:[%s112_s1] sm:$0x1] %v49_v15 }

// kernel: video_autoencoder_forward.1
= control target key start
LH: loop header
LB: loop body
LE: loop exit
PB: predicated region body
PF: predicated region fallthrough
CT: control target
= control target key end

     0   :  { %s2454_s18 = smov 0   ;;  %s2456_s19 = smov 0   ;;  %s3414_s0 = inlined_call_operand.vmem [shape: bf16[2,2,264,81], index: 0, kind: input, shape index: {}]   ;;  %s3415_s1 = inlined_call_operand.vmem [shape: bf16[81,16], index: 1, kind: input, shape index: {}]   ;;  %s3416_s2 = inlined_call_operand.vmem [shape: f32[1,16], index: 2, kind: input, shape index: {}]   ;;  %s3417_s3 = inlined_call_operand.vmem [shape: bf16[128,24], index: 3, kind: input, shape index: {}]   ;;  %s3418_s4 = inlined_call_operand.vmem [shape: f32[1,24], index: 4, kind: input, shape index: {}]   ;;  %s3419_s5 = inlined_call_operand.vmem [shape: bf16[2,2,168,24], index: 5, kind: output, shape index: {}]  }
   0x1   :  { %s2458_s20 = smov 0   ;;  %s2460_s21 = smov 0  }
   0x2   :  { %s2462_s22 = smov 0  }
   0x3 LB: > { %s24_s23 = sadd.s32 1, %s2406_s20  ;;  %s27_s24 = sadd.s32 1, %s2410_s21  ;;  %s2414_s22 = sphi %s2462_s22, %s15_s22   ;;  %s2410_s21 = sphi %s2460_s21, %s3423_s21   ;;  %s2406_s20 = sphi %s2458_s20, %s3422_s20   ;;  %s2402_s19 = sphi %s2456_s19, %s3421_s19   ;;  %s2398_s18 = sphi %s2454_s18, %s3420_s18  }
   0x4   : > { %p25_p0 = scmp.ge.s32.totalorder %s24_s23, 2  ;;  %p1900_p1 = scmp.ge.s32.totalorder %s2414_s22, 1 }
   0x5   : > { %p207_p2 = scmp.lt.s32.totalorder %s2414_s22, 5 }
   0x6   : > { %s3425_s23 = smov (%p25_p0, %s24_s23), 0  ;;  %s3427_s24 = smov (!%p25_p0, %s27_s24), %s2410_s21 }
   0x7   : > { %p208_p3 = pnand %p1900_p1, %p207_p2  ;;  %p29_p4 = scmp.ge.s32.totalorder %s3427_s24, 2 }
   0x8   : > { %p243_p5 = scmp.lt.s32.totalorder (!%p208_p3), %s2402_s19, 1  ;;  %p245_p6 = scmp.lt.s32.totalorder (!%p208_p3), %s2398_s18, 1 }
   0x9   : > { %s3429_s24 = smov (%p29_p4, %s3427_s24), 0  ;;  %211 = sbr.rel (%p208_p3) target bundleno = 694 (0x2b6), region = 40 }
   0xa   : > { %s2417_s28 = smov (!%p208_p3), 16   ;;  %s2418_s29 = smov (!%p208_p3), 64  }
   0xb   : > { %s2419_s30 = smov (!%p208_p3), 48   ;;  %s2422_s8 = smov (!%p208_p3), 32  }
   0xc   : > { %s2423_s9 = smov (!%p208_p3), 112  }
   0xe   : > { %v305_v0 = vld [vmem:[%s3415_s1 + $0x28] sm:$0x1]  ;;  %vm478_vm0 = vcmask 1040384   ;;  %v2416_v2 = vmov 0   ;;  %v2058_v6 = vld [vmem:[%s3415_s1 + $0x20] sm:$0xff]  ;;  %s3431_s19 = smov (!%p243_p5, %s2402_s19), 1 }
   0xf   : > { %v414_v1 = vunpack.c.l.b16 %v305_v0  ;;  %v480_v3 = vsel %vm478_vm0, 65535, %v2416_v2  ;;  %s3433_s18 = smov (!%p245_p6, %s2398_s18), 1  ;;  %v2057_v7 = vld [vmem:[%s3415_s1 + $0x18] sm:$0xff]  ;;  %s2237_s6 = smul.u32 66, %s3431_s19  ;;  %v2056_v8 = vld [vmem:[%s3415_s1 + $0x10] sm:$0xff]  ;;  %v2055_v9 = vld [vmem:[%s3415_s1 + $0x8] sm:$0xff] }
  0x10   : > { %s2236_s7 = smul.u32 33, %s3433_s18  ;;  %v2054_v10 = vld [vmem:[%s3415_s1] sm:$0xff]  ;;  %vm426_vm1 = vcmask 662528   ;;  %vm643_vm2 = vcmask 125952   ;;  %vm773_vm3 = vsmask.f32 7424 }
  0x11   : > { %v420_v4 = vpack.c.b16 %v414_v1, %v414_v1  ;;  %v2552_v27 = vld [vmem:[%s3416_s2] ss:$0 sm:$0xff]  ;;  %vm1010_vm4 = vcmask 1046528   ;;  %vm1248_vm5 = vsmask.f32 6400  ;;  %vm1373_vm6 = vcmask 261120  }
  0x12   : > { %s249_s10 = sadd.s32 %s2237_s6, %s2236_s7  ;;  %s2420_s6 = smov 80   ;;  %vm1349_vm7 = vcmask 130048   ;;  %vm1396_vm8 = vcmask 392192   ;;  %vm1419_vm9 = vcmask 523264   ;;  %vm1442_vm10 = vcmask 654336  }
  0x13   : > { %v482_v5 = vand.u32 %v480_v3, %v420_v4  ;;  %s1901_s13 = sshll.u32 %s249_s10, 2  ;;  %s2421_s7 = smov 96   ;;  %vm1465_vm11 = vcmask 785408   ;;  %vm1488_vm12 = vcmask 916480   ;;  %vm1779_vm13 = vcmask 191488  }
  0x14   : > { %s2515_s25 = scalar_lea.vmem %s3414_s0, %s1901_s13 }
  0x15   : > { %486 = vmatpush.bf16.msra.mxu0 %v482_v5  ;;  %2216 = vmatpush.bf16.msra.mxu2 %v482_v5  ;;  %v2038_v11 = vld [vmem:[%s2515_s25] sm:$0xff]  ;;  %v2045_v12 = vld [vmem:[%s2515_s25 + $0x38] sm:$0xff]  ;;  %v2039_v13 = vld [vmem:[%s2515_s25 + $0x8] sm:$0xff] }
  0x16   : > { %2217 = vmatpush.bf16.msra.mxu3 %v482_v5  ;;  %v2046_v14 = vld [vmem:[%s2515_s25 + $0x40] sm:$0xff]  ;;  %v2040_v15 = vld [vmem:[%s2515_s25 + $0x10] sm:$0xff]  ;;  %v2047_v16 = vld [vmem:[%s2515_s25 + $0x48] sm:$0xff] }
  0x17   : > { %v2041_v17 = vld [vmem:[%s2515_s25 + $0x18] sm:$0xff]  ;;  %v2048_v18 = vld [vmem:[%s2515_s25 + $0x50] sm:$0xff]  ;;  %v2042_v19 = vld [vmem:[%s2515_s25 + $0x20] sm:$0xff] }
  0x18   : > { %v2049_v20 = vld [vmem:[%s2515_s25 + $0x58] sm:$0xff]  ;;  %v2043_v21 = vld [vmem:[%s2515_s25 + $0x28] sm:$0xff]  ;;  %v2050_v22 = vld [vmem:[%s2515_s25 + $0x60] sm:$0xff] }
  0x19   : > { %487 = vmatpush.bf16.msra.mxu0 %v2058_v6  ;;  %2218 = vmatpush.bf16.msra.mxu2 %v2058_v6  ;;  %v2053_v23 = vld [vmem:[%s2515_s25 + $0x78] sm:$0xff]  ;;  %v2044_v24 = vld [vmem:[%s2515_s25 + $0x30] sm:$0xff]  ;;  %v2051_v25 = vld [vmem:[%s2515_s25 + $0x68] sm:$0xff] }
  0x1a   : > { %2219 = vmatpush.bf16.msra.mxu3 %v2058_v6  ;;  %v2052_v26 = vld [vmem:[%s2515_s25 + $0x70] sm:$0xff]  ;;  %v294_v35 = vld [vmem:[%s2515_s25 + $0x80] sm:$0xf] }
  0x1b   : > { %v375_v38 = vunpack.c.l.b16 %v294_v35 }
  0x1d   : > { %488 = vmatpush.bf16.msra.mxu0 %v2057_v7  ;;  %2220 = vmatpush.bf16.msra.mxu2 %v2057_v7  ;;  %v392_v41 = vpack.c.b16 %v375_v38, %v375_v38 }
  0x1e   : > { %2221 = vmatpush.bf16.msra.mxu3 %v2057_v7 }
  0x21   : > { %489 = vmatpush.bf16.msra.mxu0 %v2056_v8  ;;  %2222 = vmatpush.bf16.msra.mxu2 %v2056_v8 }
  0x22   : > { %2223 = vmatpush.bf16.msra.mxu3 %v2056_v8 }
  0x25   : > { %490 = vmatpush.bf16.msra.mxu0 %v2055_v9  ;;  %2224 = vmatpush.bf16.msra.mxu2 %v2055_v9 }
  0x26   : > { %2225 = vmatpush.bf16.msra.mxu3 %v2055_v9 }
  0x29   : > { %491 = vmatpush.bf16.msra.mxu0 %v2054_v10  ;;  %2226 = vmatpush.bf16.msra.mxu2 %v2054_v10 }
  0x2a   : > { %2227 = vmatpush.bf16.msra.mxu3 %v2054_v10 }
  0x2c   : > { %1987 = vmatmul.msk.bf16.vlgmr.msra.gmra.mxu0 %vm426_vm1, %v2038_v11  ;;  %1994 = vmatmul.msk.bf16.vlgmr.msra.gmra.mxu2 %vm426_vm1, %v2045_v12 }
  0x2d   : > { %2002 = vmatmul.msk.bf16.vlgmr.msra.gmra.mxu3 %vm426_vm1, %v2053_v23 }
  0x3c   : > { %1988 = vmatmul.msk.bf16.gmra.mxu0 %vm426_vm1, %v2039_v13  ;;  %1995 = vmatmul.msk.bf16.gmra.mxu2 %vm426_vm1, %v2046_v14 }
  0x3d   : > { %2003 = vmatmul.msk.bf16.gmra.mxu3 %vm426_vm1, %v392_v41 }
  0x4c   : > { %1989 = vmatmul.msk.bf16.gmra.mxu0 %vm426_vm1, %v2040_v15  ;;  %1996 = vmatmul.msk.bf16.gmra.mxu2 %vm426_vm1, %v2047_v16 }
  0x5c   : > { %1990 = vmatmul.msk.bf16.gmra.mxu0 %vm426_vm1, %v2041_v17  ;;  %1997 = vmatmul.msk.bf16.gmra.mxu2 %vm426_vm1, %v2048_v18 }
  0x6c   : > { %1991 = vmatmul.msk.bf16.gmra.mxu0 %vm426_vm1, %v2042_v19  ;;  %1998 = vmatmul.msk.bf16.gmra.mxu2 %vm426_vm1, %v2049_v20 }
  0x7c   : > { %1992 = vmatmul.msk.bf16.gmra.mxu0 %vm426_vm1, %v2043_v21  ;;  %1999 = vmatmul.msk.bf16.gmra.mxu2 %vm426_vm1, %v2050_v22 }
  0x8c   : > { %1993 = vmatmul.msk.bf16.gmra.mxu0 %vm426_vm1, %v2044_v24  ;;  %2000 = vmatmul.msk.bf16.gmra.mxu2 %vm426_vm1, %v2051_v25 }
  0x9c   : > { %2001 = vmatmul.msk.bf16.gmra.mxu2 %vm426_vm1, %v2052_v26 }
  0xa9   : > { %v493_v28 = vpop.f32.mrf.mxu0 }
  0xaa   : > { %v494_v29 = vadd.f32 %v2552_v27, %v493_v28 }
  0xac   : > { %v577_v30 = vmax.f32 %v494_v29, 0.0 }
  0xae   : > { %v610_v31 = vpack.c.bf16 %v577_v30, %v577_v30 }
  0xaf   : > { %v528_v32 = vpop.f32.mrf.mxu2 }
  0xb0   : > { %644 = vst.msk [vmem:[#allocation2] sm:$0xf] %vm643_vm2, %v610_v31  ;;  %v529_v33 = vadd.f32 %v2552_v27, %v528_v32 }
  0xb1   : > { %v495_v34 = vpop.f32.mrf.mxu0 }
  0xb2   : > { %v591_v36 = vmax.f32 %v529_v33, 0.0  ;;  %v496_v37 = vadd.f32 %v2552_v27, %v495_v34 }
  0xb4   : > { %v624_v39 = vpack.c.bf16 %v591_v36, %v591_v36  ;;  %v578_v40 = vmax.f32 %v496_v37, 0.0 }
  0xb6   : > { %658 = vst.msk [vmem:[#allocation2 + $0x38] sm:$0xf] %vm643_vm2, %v624_v39  ;;  %v611_v42 = vpack.c.bf16 %v578_v40, %v578_v40 }
  0xb7   : > { %v530_v43 = vpop.f32.mrf.mxu2 }
  0xb8   : > { %645 = vst.msk [vmem:[#allocation2 + $0x4] sm:$0xf] %vm643_vm2, %v611_v42  ;;  %v531_v44 = vadd.f32 %v2552_v27, %v530_v43 }
  0xb9   : > { %v498_v45 = vpop.f32.mrf.mxu0 }
  0xba   : > { %v592_v46 = vmax.f32 %v531_v44, 0.0  ;;  %v499_v47 = vadd.f32 %v2552_v27, %v498_v45 }
  0xbc   : > { %v625_v48 = vpack.c.bf16 %v592_v46, %v592_v46  ;;  %v579_v49 = vmax.f32 %v499_v47, 0.0 }
  0xbe   : > { %659 = vst.msk [vmem:[#allocation2 + $0x3c] sm:$0xf] %vm643_vm2, %v625_v48  ;;  %v612_v50 = vpack.c.bf16 %v579_v49, %v579_v49 }
  0xbf   : > { %v533_v51 = vpop.f32.mrf.mxu2  ;;  %v2569_v60 = vld [vmem:[#allocation2] sm:$0xff]  }
  0xc0   : > { %646 = vst.msk [vmem:[#allocation2 + $0x8] sm:$0xf] %vm643_vm2, %v612_v50  ;;  %v534_v52 = vadd.f32 %v2552_v27, %v533_v51  ;;  %v777_v1 = vshll.u32 %v2569_v60, 16  ;;  %v701_v9 = vld [vmem:[#allocation2 + $0x4] sm:$0xe]  ;;  %v775_v11 = vshrl.u32 %v2569_v60, 16  ;;  %v2070_v21 = vunpack.c.h.b16 %v2569_v60 }
  0xc1   : > { %v500_v53 = vpop.f32.mrf.mxu0  ;;  %v1008_v20 = vunpack.c.l.b16 %v701_v9 }
  0xc2   : > { %v593_v54 = vmax.f32 %v534_v52, 0.0  ;;  %v501_v55 = vadd.f32 %v2552_v27, %v500_v53  ;;  %v779_v6 = vrot.slane %v777_v1, 1 }
  0xc4   : > { %v626_v56 = vpack.c.bf16 %v593_v54, %v593_v54  ;;  %v580_v57 = vmax.f32 %v501_v55, 0.0  ;;  %v780_v18 = vor.u32 %v779_v6, %v775_v11 }
  0xc5   : > { %v2575_v4 = vld [vmem:[#allocation2 + $0x38] sm:$0xff]  }
  0xc6   : > { %660 = vst.msk [vmem:[#allocation2 + $0x40] sm:$0xf] %vm643_vm2, %v626_v56  ;;  %v613_v58 = vpack.c.bf16 %v580_v57, %v580_v57  ;;  %v830_v13 = vshll.u32 %v2575_v4, 16  ;;  %v834_v31 = vshrl.u32 %v2575_v4, 16  ;;  %v1156_v46 = vrot.slane %v2575_v4, 1 }
  0xc7   : > { %v535_v59 = vpop.f32.mrf.mxu2 }
  0xc8   : > { %647 = vst.msk [vmem:[#allocation2 + $0xc] sm:$0xf] %vm643_vm2, %v613_v58  ;;  %v536_v61 = vadd.f32 %v2552_v27, %v535_v59  ;;  %v2592_v25 = vrot.slane %v830_v13, 1 }
  0xc9   : > { %v503_v62 = vpop.f32.mrf.mxu0 }
  0xca   : > { %v594_v63 = vmax.f32 %v536_v61, 0.0  ;;  %v504_v0 = vadd.f32 %v2552_v27, %v503_v62  ;;  %v836_v36 = vor.u32 %v834_v31, %v2592_v25 }
  0xcc   : > { %v627_v2 = vpack.c.bf16 %v594_v63, %v594_v63  ;;  %v581_v3 = vmax.f32 %v504_v0, 0.0 }
  0xcd   : > { %v2613_v47 = vld [vmem:[#allocation2 + $0x3c] sm:$0xff]  }
  0xce   : > { %661 = vst.msk [vmem:[#allocation2 + $0x44] sm:$0xf] %vm643_vm2, %v627_v2  ;;  %v614_v5 = vpack.c.bf16 %v581_v3, %v581_v3  ;;  %v958_v56 = vshrl.u32 %v2613_v47, 16  ;;  %v954_v1 = vshll.u32 %v2613_v47, 16 }
  0xcf   : > { %v538_v7 = vpop.f32.mrf.mxu2  ;;  %v2578_v8 = vld [vmem:[#allocation2 + $0x8] sm:$0xff]  }
  0xd0   : > { %648 = vst.msk [vmem:[#allocation2 + $0x10] sm:$0xf] %vm643_vm2, %v614_v5  ;;  %v539_v10 = vadd.f32 %v2552_v27, %v538_v7  ;;  %v782_v12 = vshll.u32 %v2578_v8, 16  ;;  %v2073_v15 = vunpack.c.l.b16 %v2578_v8  ;;  %v1024_v5 = vrot.slane %v2613_v47, 1 }
  0xd1   : > { %v505_v14 = vpop.f32.mrf.mxu0  ;;  %v1261_v13 = vrot.slane %v958_v56, 1 }
  0xd2   : > { %v595_v16 = vmax.f32 %v539_v10, 0.0  ;;  %v506_v17 = vadd.f32 %v2552_v27, %v505_v14  ;;  %v2587_v19 = vrot.slane %v782_v12, 1  ;;  %v1009_v28 = vpack.c.b16 %v2073_v15, %v1008_v20 }
  0xd3   : > { %v887_v29 = vpack.c.b16 %v2073_v15, %v2070_v21 }
  0xd4   : > { %v628_v22 = vpack.c.bf16 %v595_v16, %v595_v16  ;;  %v582_v23 = vmax.f32 %v506_v17, 0.0  ;;  %v785_v24 = vsel %vm773_vm3, %v780_v18, %v2587_v19  ;;  %v1011_v40 = vrot.slane %v1009_v28, 1 }
  0xd5   : > { %861 = vrot.lane.b32.xlu0 %v785_v24, %s2417_s28  ;;  %v2595_v26 = vld [vmem:[#allocation2 + $0x40] sm:$0xff]   ;;  %v901_v42 = vshll.u32 %v887_v29, 16  ;;  %v899_v59 = vshrl.u32 %v887_v29, 16  ;;  %v1262_v18 = vrot.slane %v954_v1, 2 }
  0xd6   : > { %662 = vst.msk [vmem:[#allocation2 + $0x48] sm:$0xf] %vm643_vm2, %v628_v22  ;;  %v615_v30 = vpack.c.bf16 %v582_v23, %v582_v23  ;;  %v838_v32 = vshll.u32 %v2595_v26, 16  ;;  %v1158_v38 = vrot.slane %v2595_v26, 1  ;;  %v786_v23 = vshrl.u32 %v2578_v8, 16 }
  0xd7   : > { %v540_v33 = vpop.f32.mrf.mxu2  ;;  %v2600_v34 = vld [vmem:[#allocation2 + $0xc] sm:$0xff]   ;;  %v903_v54 = vrot.slane %v901_v42, 1 }
  0xd8   : > { %649 = vst.msk [vmem:[#allocation2 + $0x14] sm:$0xf] %vm643_vm2, %v615_v30  ;;  %v541_v35 = vadd.f32 %v2552_v27, %v540_v33  ;;  %v2605_v37 = vrot.slane %v838_v32, 1  ;;  %v1012_v41 = vrot.slane %v2600_v34, 1  ;;  %v1159_v51 = vsel %vm1010_vm4, %v1156_v46, %v1158_v38 }
  0xd9   : > { %v508_v39 = vpop.f32.mrf.mxu0  ;;  %v906_v52 = vshll.u32 %v2600_v34, 16  ;;  %v904_v6 = vor.u32 %v903_v54, %v899_v59  ;;  %v2668_v30 = vor.u32 %v1262_v18, %v1261_v13  ;;  %v788_v32 = vor.u32 %v786_v23, %v2587_v19 }
  0xda   : > { %v596_v43 = vmax.f32 %v541_v35, 0.0  ;;  %v509_v44 = vadd.f32 %v2552_v27, %v508_v39  ;;  %v841_v45 = vsel %vm773_vm3, %v836_v36, %v2605_v37  ;;  %v1013_v48 = vsel %vm1010_vm4, %v1011_v40, %v1012_v41 }
  0xdb   : > { %1132 = vrot.lane.b32.xlu2 %v841_v45, %s2418_s29  ;;  %1032 = vrot.lane.b32.xlu1 %v1013_v48, %s2419_s30  ;;  %v2636_v0 = vrot.slane %v906_v52, 1  ;;  %v842_v48 = vshrl.u32 %v2595_v26, 16 }
  0xdc   : > { %v629_v49 = vpack.c.bf16 %v596_v43, %v596_v43  ;;  %v583_v50 = vmax.f32 %v509_v44, 0.0  ;;  %v2683_v44 = vrot.slane %v954_v1, 1 }
  0xdd   : > { %1178 = vrot.lane.b32.xlu0 %v1159_v51, %s2420_s6  ;;  %v2627_v53 = vld [vmem:[#allocation2 + $0x44] sm:$0xff]   ;;  %v909_v17 = vsel %vm773_vm3, %v904_v6, %v2636_v0  ;;  %v844_v54 = vor.u32 %v842_v48, %v2605_v37 }
  0xde   : > { %663 = vst.msk [vmem:[#allocation2 + $0x4c] sm:$0xf] %vm643_vm2, %v629_v49  ;;  %v616_v55 = vpack.c.bf16 %v583_v50, %v583_v50  ;;  %v1026_v58 = vrot.slane %v2627_v53, 1  ;;  %v962_v61 = vshll.u32 %v2627_v53, 16  ;;  %v966_v62 = vshrl.u32 %v2627_v53, 16 }
  0xdf   : > { %v543_v57 = vpop.f32.mrf.mxu2  ;;  %v2639_v2 = vld [vmem:[#allocation2 + $0x10] sm:$0xff]   ;;  %v960_v59 = vor.u32 %v958_v56, %v2683_v44 }
  0xe0   : > { %650 = vst.msk [vmem:[#allocation2 + $0x18] sm:$0xf] %vm643_vm2, %v616_v55  ;;  %v544_v63 = vadd.f32 %v2552_v27, %v543_v57  ;;  %v1265_v10 = vrot.slane %v966_v62, 1  ;;  %v1266_v11 = vrot.slane %v962_v61, 2  ;;  %v1027_v12 = vsel %vm1010_vm4, %v1024_v5, %v1026_v58 }
  0xe1   : > { %v510_v3 = vpop.f32.mrf.mxu0  ;;  %v790_v14 = vshll.u32 %v2639_v2, 16  ;;  %v2689_v51 = vrot.slane %v962_v61, 1 }
  0xe2   : > { %v597_v7 = vmax.f32 %v544_v63, 0.0  ;;  %v511_v9 = vadd.f32 %v2552_v27, %v510_v3  ;;  %v2659_v21 = vor.u32 %v1266_v11, %v1265_v10 }
  0xe3   : > { %875 = vrot.lane.b32.xlu2 %v841_v45, %s2417_s28  ;;  %1227 = vrot.lane.b32.xlu1 %v1027_v12, %s2421_s7  ;;  %v2662_v24 = vrot.slane %v790_v14, 1  ;;  %v965_v37 = vsel %vm773_vm3, %v960_v59, %v2689_v51 }
  0xe4   : > { %v630_v15 = vpack.c.bf16 %v597_v7, %v597_v7  ;;  %v584_v16 = vmax.f32 %v511_v9, 0.0  ;;  %v1268_v36 = vsel %vm1248_vm5, %v2668_v30, %v2659_v21  ;;  %v910_v9 = vshrl.u32 %v2600_v34, 16 }
  0xe5   : > { %985 = vrot.lane.b32.xlu0 %v909_v17, %s2422_s8  ;;  %v2664_v28 = vld [vmem:[#allocation2 + $0x48] sm:$0xff]   ;;  %v793_v40 = vsel %vm773_vm3, %v788_v32, %v2662_v24 }
  0xe6   : > { %664 = vst.msk [vmem:[#allocation2 + $0x50] sm:$0xf] %vm643_vm2, %v630_v15  ;;  %v617_v20 = vpack.c.bf16 %v584_v16, %v584_v16  ;;  %v846_v39 = vshll.u32 %v2664_v28, 16  ;;  %v1160_v11 = vrot.slane %v2664_v28, 1  ;;  %v2106_v14 = vunpack.c.h.b16 %v2664_v28 }
  0xe7   : > { %v545_v22 = vpop.f32.mrf.mxu2  ;;  %v2680_v19 = vld [vmem:[#allocation2 + $0x14] sm:$0xff]   ;;  %v912_v17 = vor.u32 %v910_v9, %v2636_v0 }
  0xe8   : > { %651 = vst.msk [vmem:[#allocation2 + $0x1c] sm:$0xf] %vm643_vm2, %v617_v20  ;;  %v546_v29 = vadd.f32 %v2552_v27, %v545_v22  ;;  %v2687_v49 = vrot.slane %v846_v39, 1  ;;  %v1014_v55 = vrot.slane %v2680_v19, 1  ;;  %v914_v63 = vshll.u32 %v2680_v19, 16 }
  0xe9   : > { %v513_v31 = vpop.f32.mrf.mxu0  ;;  %v1161_v39 = vsel %vm1010_vm4, %v1158_v38, %v1160_v11 }
  0xea   : > { %v598_v33 = vmax.f32 %v546_v29, 0.0  ;;  %v514_v35 = vadd.f32 %v2552_v27, %v513_v31  ;;  %v2702_v61 = vsel %vm773_vm3, %v844_v54, %v2687_v49  ;;  %v1015_v56 = vsel %vm1010_vm4, %v1012_v41, %v1014_v55 }
  0xeb   : > { %1331 = vrot.lane.b32.xlu2 %v1268_v36, %s2423_s9  ;;  %863 = vrot.lane.b32.xlu1 %v793_v40, %s2417_s28  ;;  %v916_v10 = vrot.slane %v914_v63, 1 }
  0xec   : > { %v631_v42 = vpack.c.bf16 %v598_v33, %v598_v33  ;;  %v585_v43 = vmax.f32 %v514_v35, 0.0 }
  0xed   : > { %1046 = vrot.lane.b32.xlu0 %v1027_v12, %s2419_s30  ;;  %v917_v0 = vsel %vm773_vm3, %v912_v17, %v916_v10 }
  0xee   : > { %665 = vst.msk [vmem:[#allocation2 + $0x54] sm:$0xf] %vm643_vm2, %v631_v42  ;;  %v618_v45 = vpack.c.bf16 %v585_v43, %v585_v43 }
  0xef   : > { %v548_v50 = vpop.f32.mrf.mxu2  ;;  %v2726_v18 = vld [vmem:[#allocation2 + $0x18] sm:$0xff]  }
  0xf0   : > { %652 = vst.msk [vmem:[#allocation2 + $0x20] sm:$0xf] %vm643_vm2, %v618_v45  ;;  %v549_v52 = vadd.f32 %v2552_v27, %v548_v50  ;;  %v798_v36 = vshll.u32 %v2726_v18, 16 }
  0xf1   : > { %v515_v57 = vpop.f32.mrf.mxu0 }
  0xf2   : > { %v599_v1 = vmax.f32 %v549_v52, 0.0  ;;  %v516_v3 = vadd.f32 %v2552_v27, %v515_v57  ;;  %v794_v52 = vshrl.u32 %v2639_v2, 16  ;;  %v2763_v54 = vrot.slane %v798_v36, 1 }
  0xf3   : > { %1134 = vrot.lane.b32.xlu2 %v2702_v61, %s2418_s29  ;;  %999 = vrot.lane.b32.xlu1 %v965_v37, %s2422_s8  ;;  %v918_v37 = vshrl.u32 %v2680_v19, 16 }
  0xf4   : > { %v632_v6 = vpack.c.bf16 %v599_v1, %v599_v1  ;;  %v586_v7 = vmax.f32 %v516_v3, 0.0  ;;  %v796_v3 = vor.u32 %v794_v52, %v2662_v24 }
  0xf5   : > { %1034 = vrot.lane.b32.xlu0 %v1015_v56, %s2419_s30  ;;  %v2717_v12 = vld [vmem:[#allocation2 + $0x50] sm:$0xff]  }
  0xf6   : > { %666 = vst.msk [vmem:[#allocation2 + $0x58] sm:$0xf] %vm643_vm2, %v632_v6  ;;  %v619_v13 = vpack.c.bf16 %v586_v7, %v586_v7  ;;  %v2722_v15 = vunpack.c.l.b16 %v2717_v12  ;;  %v1162_v16 = vrot.slane %v2717_v12, 1  ;;  %v1081_v34 = vshll.u32 %v2717_v12, 16  ;;  %v568_v7 = vpop.f32.mrf.mxu3 }
  0xf7   : > { %v550_v41 = vpop.f32.mrf.mxu2  ;;  %v2734_v23 = vld [vmem:[#allocation2 + $0x1c] sm:$0xff]   ;;  %v1085_v26 = vshrl.u32 %v2717_v12, 16  ;;  %v2110_v63 = vunpack.c.h.b16 %v2717_v12 }
  0xf8   : > { %653 = vst.msk [vmem:[#allocation2 + $0x24] sm:$0xf] %vm643_vm2, %v619_v13  ;;  %v551_v20 = vadd.f32 %v2552_v27, %v550_v41  ;;  %v2732_v22 = vpack.c.b16 %v2722_v15, %v2106_v14  ;;  %v2739_v29 = vsel %vm1010_vm4, %v1160_v11, %v1162_v16  ;;  %v2751_v40 = vrot.slane %v1081_v34, 1 }
  0xf9   : > { %v518_v31 = vpop.f32.mrf.mxu0  ;;  %v922_v48 = vshll.u32 %v2734_v23, 16  ;;  %v801_v14 = vsel %vm773_vm3, %v796_v3, %v2763_v54  ;;  %v920_v41 = vor.u32 %v918_v37, %v916_v10 }
  0xfa   : > { %v600_v32 = vmax.f32 %v551_v20, 0.0  ;;  %v519_v33 = vadd.f32 %v2552_v27, %v518_v31  ;;  %v2744_v35 = vrot.slane %v2732_v22, 1  ;;  %v970_v17 = vshll.u32 %v2732_v22, 16 }
  0xfb   : > { %987 = vrot.lane.b32.xlu2 %v917_v0, %s2422_s8  ;;  %1180 = vrot.lane.b32.xlu1 %v1161_v39, %s2420_s6  ;;  %v2773_v6 = vrot.slane %v922_v48, 1  ;;  %v974_v10 = vshrl.u32 %v2732_v22, 16 }
  0xfc   : > { %v633_v42 = vpack.c.bf16 %v600_v32, %v600_v32  ;;  %v587_v43 = vmax.f32 %v519_v33, 0.0  ;;  %v1029_v45 = vsel %vm1010_vm4, %v1026_v58, %v2744_v35  ;;  %v2767_v58 = vor.u32 %v1085_v26, %v2751_v40 }
  0xfd   : > { %1229 = vrot.lane.b32.xlu0 %v1029_v45, %s2421_s7  ;;  %v700_v50 = vld [vmem:[#allocation2 + $0x58] sm:$0x1]  ;;  %v925_v0 = vsel %vm773_vm3, %v920_v41, %v2773_v6  ;;  %v2805_v26 = vrot.slane %v970_v17, 1 }
  0xfe   : > { %667 = vst.msk [vmem:[#allocation2 + $0x5c] sm:$0xf] %vm643_vm2, %v633_v42  ;;  %v620_v38 = vpack.c.bf16 %v587_v43, %v587_v43  ;;  %v886_v57 = vunpack.c.l.b16 %v700_v50  ;;  %v569_v42 = vadd.f32 %v2552_v27, %v568_v7  ;;  %v850_v50 = vshrl.u32 %v2664_v28, 16 }
  0xff   : > { %v553_v59 = vpop.f32.mrf.mxu2  ;;  %v1269_v7 = vrot.slane %v974_v10, 1 }
 0x100   : > { %654 = vst.msk [vmem:[#allocation2 + $0x28] sm:$0xf] %vm643_vm2, %v620_v38  ;;  %v554_v1 = vadd.f32 %v2552_v27, %v553_v59  ;;  %v2775_v9 = vpack.c.b16 %v886_v57, %v2110_v63  ;;  %v968_v57 = vor.u32 %v966_v62, %v2689_v51  ;;  %v607_v59 = vmax.f32 %v569_v42, 0.0 }
 0x101   : > { %v520_v56 = vpop.f32.mrf.mxu0  ;;  %v2818_v28 = vor.u32 %v850_v50, %v2687_v49  ;;  %v802_v42 = vshrl.u32 %v2726_v18, 16 }
 0x102   : > { %v601_v11 = vmax.f32 %v554_v1, 0.0  ;;  %v521_v13 = vadd.f32 %v2552_v27, %v520_v56  ;;  %v978_v24 = vshll.u32 %v2775_v9, 16  ;;  %v1030_v34 = vrot.slane %v2775_v9, 1  ;;  %v570_v1 = vpop.f32.mrf.mxu3 }
 0x103   : > { %865 = vrot.lane.b32.xlu2 %v801_v14, %s2417_s28  ;;  %877 = vrot.lane.b32.xlu1 %v2702_v61, %s2417_s28  ;;  %v982_v39 = vshrl.u32 %v2775_v9, 16  ;;  %v1270_v56 = vrot.slane %v970_v17, 2  ;;  %v640_v62 = vpack.c.bf16 %v607_v59, %v607_v59  ;;  %v1084_v49 = vsel %vm773_vm3, %v2818_v28, %v2751_v40 }
 0x104   : > { %v634_v20 = vpack.c.bf16 %v601_v11, %v601_v11  ;;  %v588_v31 = vmax.f32 %v521_v13, 0.0  ;;  %v2792_v33 = vrot.slane %v978_v24, 1  ;;  %v2798_v36 = vsel %vm1010_vm4, %v2744_v35, %v1030_v34  ;;  %v2822_v11 = vld [vmem:[#allocation2 + $0x20] sm:$0xff]  }
 0x105   : > { %989 = vrot.lane.b32.xlu0 %v925_v0, %s2422_s8  ;;  %v2790_v32 = vld [vmem:[#allocation2 + $0x58] sm:$0xff]   ;;  %v571_v13 = vadd.f32 %v2552_v27, %v570_v1  ;;  %674 = vst.msk [vmem:[#allocation2 + $0x78] sm:$0xf] %vm643_vm2, %v640_v62  ;;  %v2844_v0 = vor.u32 %v1270_v56, %v1269_v7 }
 0x106   : > { %668 = vst.msk [vmem:[#allocation2 + $0x60] sm:$0xf] %vm643_vm2, %v634_v20  ;;  %v621_v61 = vpack.c.bf16 %v588_v31, %v588_v31  ;;  %v2113_v43 = vunpack.c.l.b16 %v2790_v32  ;;  %v2808_v38 = vor.u32 %v982_v39, %v2792_v33  ;;  %v806_v20 = vshll.u32 %v2822_v11, 16 }
 0x107   : > { %v555_v48 = vpop.f32.mrf.mxu2  ;;  %v608_v41 = vmax.f32 %v571_v13, 0.0  ;;  %v712_v62 = vld [vmem:[#allocation2 + $0x28] sm:$0xe] }
 0x108   : > { %655 = vst.msk [vmem:[#allocation2 + $0x2c] sm:$0xf] %vm643_vm2, %v621_v61  ;;  %v556_v52 = vadd.f32 %v2552_v27, %v555_v48  ;;  %v2815_v3 = vpack.c.b16 %v2113_v43, %v2110_v63  ;;  %v973_v63 = vsel %vm773_vm3, %v968_v57, %v2805_v26  ;;  %v1016_v61 = vrot.slane %v2734_v23, 1  ;;  %v2850_v48 = vld [vmem:[#allocation2 + $0x24] sm:$0xff]  }
 0x109   : > { %v523_v37 = vpop.f32.mrf.mxu0  ;;  %v641_v40 = vpack.c.bf16 %v608_v41, %v608_v41  ;;  %v808_v50 = vrot.slane %v806_v20, 1  ;;  %v804_v57 = vor.u32 %v802_v42, %v2763_v54  ;;  %v930_v13 = vshll.u32 %v2850_v48, 16 }
 0x10a   : > { %v602_v14 = vmax.f32 %v556_v52, 0.0  ;;  %v524_v53 = vadd.f32 %v2552_v27, %v523_v37  ;;  %v1211_v51 = vrot.slane %v2815_v3, 1  ;;  %v1272_v37 = vsel %vm1248_vm5, %v2659_v21, %v2844_v0 }
 0x10b   : > { %1048 = vrot.lane.b32.xlu2 %v1029_v45, %s2419_s30  ;;  %1136 = vrot.lane.b32.xlu1 %v1084_v49, %s2418_s29  ;;  %675 = vst.msk [vmem:[#allocation2 + $0x7c] sm:$0xf] %vm643_vm2, %v641_v40  ;;  %v1017_v56 = vsel %vm1010_vm4, %v1014_v55, %v1016_v61  ;;  %v809_v54 = vsel %vm773_vm3, %v804_v57, %v808_v50  ;;  %v810_v21 = vshrl.u32 %v2822_v11, 16  ;;  %v1164_v41 = vrot.slane %v2790_v32, 1 }
 0x10c   : > { %v635_v17 = vpack.c.bf16 %v602_v14, %v602_v14  ;;  %v589_v24 = vmax.f32 %v524_v53, 0.0  ;;  %v2840_v45 = vsel %vm1010_vm4, %v2744_v35, %v1211_v51  ;;  %v932_v20 = vrot.slane %v930_v13, 1 }
 0x10d   : > { %1001 = vrot.lane.b32.xlu0 %v973_v63, %s2422_s8  ;;  %v1018_v42 = vrot.slane %v2850_v48, 1 }
 0x10e   : > { %669 = vst.msk [vmem:[#allocation2 + $0x64] sm:$0xf] %vm643_vm2, %v635_v17  ;;  %v622_v31 = vpack.c.bf16 %v589_v24, %v589_v24  ;;  %v926_v24 = vshrl.u32 %v2734_v23, 16  ;;  %v1151_v23 = vunpack.c.l.b16 %v712_v62 }
 0x10f   : > { %v558_v39 = vpop.f32.mrf.mxu2  ;;  %v2848_v43 = vld [vmem:[#allocation2 + $0x28] sm:$0xff]  }
 0x110   : > { %656 = vst.msk [vmem:[#allocation2 + $0x30] sm:$0xf] %vm643_vm2, %v622_v31  ;;  %v559_v35 = vadd.f32 %v2552_v27, %v558_v39  ;;  %v814_v7 = vshll.u32 %v2848_v43, 16  ;;  %v2090_v40 = vunpack.c.h.b16 %v2848_v43  ;;  %v812_v39 = vor.u32 %v810_v21, %v808_v50 }
 0x111   : > { %v525_v52 = vpop.f32.mrf.mxu0 }
 0x112   : > { %v603_v59 = vmax.f32 %v559_v35, 0.0  ;;  %v526_v1 = vadd.f32 %v2552_v27, %v525_v52  ;;  %v816_v63 = vrot.slane %v814_v7, 1  ;;  %v928_v52 = vor.u32 %v926_v24, %v2773_v6  ;;  %v713_v6 = vld [vmem:[#allocation2 + $0x2c] sm:$0xe] }
 0x113   : > { %1333 = vrot.lane.b32.xlu2 %v1272_v37, %s2423_s9  ;;  %1036 = vrot.lane.b32.xlu1 %v1017_v56, %s2419_s30  ;;  %v1152_v50 = vpack.c.b16 %v2090_v40, %v1151_v23  ;;  %v1019_v7 = vsel %vm1010_vm4, %v1016_v61, %v1018_v42 }
 0x114   : > { %v636_v14 = vpack.c.bf16 %v603_v59, %v603_v59  ;;  %v590_v53 = vmax.f32 %v526_v1, 0.0  ;;  %v817_v59 = vsel %vm773_vm3, %v812_v39, %v816_v63  ;;  %v933_v1 = vsel %vm773_vm3, %v928_v52, %v932_v20 }
 0x115   : > { %867 = vrot.lane.b32.xlu0 %v809_v54, %s2417_s28  ;;  %v2870_v49 = vld [vmem:[#allocation2 + $0x60] sm:$0xff]  }
 0x116   : > { %670 = vst.msk [vmem:[#allocation2 + $0x68] sm:$0xf] %vm643_vm2, %v636_v14  ;;  %v623_v19 = vpack.c.bf16 %v590_v53, %v590_v53  ;;  %v1166_v55 = vrot.slane %v2870_v49, 1  ;;  %v1153_v14 = vrot.slane %v1152_v50, 1  ;;  %v818_v53 = vshrl.u32 %v2848_v43, 16 }
 0x117   : > { %v560_v17 = vpop.f32.mrf.mxu2 }
 0x118   : > { %657 = vst.msk [vmem:[#allocation2 + $0x34] sm:$0xf] %vm643_vm2, %v623_v19  ;;  %v561_v31 = vadd.f32 %v2552_v27, %v560_v17  ;;  %v2885_v35 = vsel %vm1010_vm4, %v1164_v41, %v1166_v55  ;;  %v820_v17 = vor.u32 %v818_v53, %v816_v63 }
 0x11a   : > { %v604_v57 = vmax.f32 %v561_v31, 0.0  ;;  %v1199_v31 = vunpack.c.l.b16 %v713_v6 }
 0x11b   : > { %869 = vrot.lane.b32.xlu2 %v817_v59, %s2417_s28  ;;  %991 = vrot.lane.b32.xlu1 %v933_v1, %s2422_s8 }
 0x11c   : > { %v637_v37 = vpack.c.bf16 %v604_v57, %v604_v57 }
 0x11d   : > { %1038 = vrot.lane.b32.xlu0 %v1019_v7, %s2419_s30  ;;  %v934_v7 = vshrl.u32 %v2850_v48, 16 }
 0x11e   : > { %671 = vst.msk [vmem:[#allocation2 + $0x6c] sm:$0xf] %vm643_vm2, %v637_v37 }
 0x11f   : > { %v563_v56 = vpop.f32.mrf.mxu2  ;;  %v2897_v13 = vld [vmem:[#allocation2 + $0x30] sm:$0xff]  }
 0x120   : > { %v2900_v54 = vld [vmem:[#allocation2 + $0x34] sm:$0xff]   ;;  %v564_v21 = vadd.f32 %v2552_v27, %v563_v56  ;;  %v2093_v62 = vunpack.c.l.b16 %v2897_v13  ;;  %v1154_v19 = vrot.slane %v2897_v13, 1  ;;  %v822_v61 = vshll.u32 %v2897_v13, 16 }
 0x121   : > { %v2907_v24 = vrot.slane %v2900_v54, 1  ;;  %v946_v6 = vshll.u32 %v2900_v54, 16  ;;  %v950_v56 = vshrl.u32 %v2900_v54, 16  ;;  %v2066_v54 = vld [vmem:[%s3417_s3 + $0x38] sm:$0xff] }
 0x122   : > { %v605_v39 = vmax.f32 %v564_v21, 0.0  ;;  %v2909_v52 = vpack.c.b16 %v2093_v62, %v2090_v40  ;;  %v1155_v23 = vsel %vm1010_vm4, %v1153_v14, %v1154_v19  ;;  %v824_v57 = vrot.slane %v822_v61, 1  ;;  %1590 = vmatpush.bf16.msra.mxu1 %v2066_v54  ;;  %2228 = vmatpush.bf16.msrb.mxu3 %v2066_v54 }
 0x123   : > { %1174 = vrot.lane.b32.xlu2 %v1155_v23, %s2420_s6  ;;  %v2917_v59 = vsel %vm1010_vm4, %v2907_v24, %v1024_v5  ;;  %v1202_v37 = vpack.c.b16 %v2093_v62, %v1199_v31  ;;  %v826_v40 = vshrl.u32 %v2897_v13, 16  ;;  %v936_v31 = vor.u32 %v934_v7, %v932_v20 }
 0x124   : > { %v638_v1 = vpack.c.bf16 %v605_v39, %v605_v39  ;;  %v2920_v63 = vsel %vm773_vm3, %v820_v17, %v824_v57  ;;  %v938_v50 = vshll.u32 %v2909_v52, 16  ;;  %v1157_v17 = vsel %vm1010_vm4, %v1154_v19, %v1156_v46  ;;  %v698_v19 = vld [vmem:[#allocation2 + $0x54] sm:$0x1] }
 0x125   : > { %1128 = vrot.lane.b32.xlu1 %v2920_v63, %s2418_s29  ;;  %1225 = vrot.lane.b32.xlu0 %v2917_v59, %s2421_s7  ;;  %v828_v5 = vor.u32 %v826_v40, %v824_v57  ;;  %v1250_v21 = vshrl.u32 %v1202_v37, 16  ;;  %v1253_v62 = vshll.u32 %v1202_v37, 16  ;;  %v1257_v23 = vrot.slane %v950_v56, 1 }
 0x126   : > { %672 = vst.msk [vmem:[#allocation2 + $0x70] sm:$0xf] %vm643_vm2, %v638_v1  ;;  %v2933_v53 = vrot.slane %v938_v50, 1  ;;  %v1258_v57 = vrot.slane %v946_v6, 2  ;;  %v771_v7 = vunpack.c.l.b16 %v698_v19 }
 0x127   : > { %v565_v47 = vpop.f32.mrf.mxu2  ;;  %v2941_v39 = vsel %vm773_vm3, %v828_v5, %v2592_v25  ;;  %v1252_v40 = vrot.slane %v1250_v21, 1  ;;  %v1209_v25 = vrot.slane %v1202_v37, 1  ;;  %v2963_v37 = vld [vmem:[#allocation2 + $0x68] sm:$0xff]  }
 0x128   : > { %v566_v14 = vadd.f32 %v2552_v27, %v565_v47  ;;  %v941_v50 = vsel %vm773_vm3, %v936_v31, %v2933_v53  ;;  %v1255_v47 = vrot.slane %v1253_v62, 2  ;;  %v1259_v46 = vor.u32 %v1258_v57, %v1257_v23  ;;  %v573_v57 = vpop.f32.mrf.mxu3 }
 0x129   : > { %v1210_v5 = vsel %vm1010_vm4, %v1209_v25, %v2907_v24  ;;  %v1168_v31 = vrot.slane %v2963_v37, 1  ;;  %v1274_v23 = vshrl.u32 %v2815_v3, 16 }
 0x12a   : > { %v606_v61 = vmax.f32 %v566_v14, 0.0  ;;  %v1256_v20 = vor.u32 %v1255_v47, %v1252_v40  ;;  %v1264_v14 = vsel %vm1248_vm5, %v1259_v46, %v2668_v30  ;;  %v1277_v30 = vshll.u32 %v2815_v3, 16 }
 0x12b   : > { %1176 = vrot.lane.b32.xlu2 %v1157_v17, %s2420_s6  ;;  %v772_v17 = vpack.c.b16 %v771_v7, %v2722_v15  ;;  %v1169_v47 = vsel %vm1010_vm4, %v1166_v55, %v1168_v31  ;;  %v1276_v25 = vrot.slane %v1274_v23, 1 }
 0x12c   : > { %v639_v1 = vpack.c.bf16 %v606_v61, %v606_v61  ;;  %v1260_v21 = vsel %vm1248_vm5, %v1256_v20, %v1259_v46  ;;  %v1020_v61 = vrot.slane %v2909_v52, 1  ;;  %v1279_v46 = vrot.slane %v1277_v30, 2 }
 0x12d   : > { %1130 = vrot.lane.b32.xlu1 %v2941_v39, %s2418_s29  ;;  %993 = vrot.lane.b32.xlu0 %v941_v50, %s2422_s8  ;;  %v574_v50 = vadd.f32 %v2552_v27, %v573_v57  ;;  %v854_v40 = vshll.u32 %v772_v17, 16 }
 0x12e   : > { %673 = vst.msk [vmem:[#allocation2 + $0x74] sm:$0xf] %vm643_vm2, %v639_v1  ;;  %v1021_v1 = vsel %vm1010_vm4, %v1018_v42, %v1020_v61  ;;  %v1280_v48 = vor.u32 %v1279_v46, %v1276_v25 }
 0x12f   : > { %v609_v20 = vmax.f32 %v574_v50, 0.0  ;;  %v856_v42 = vrot.slane %v854_v40, 1 }
 0x130   : > { %v1281_v55 = vsel %vm1248_vm5, %v2844_v0, %v1280_v48 }
 0x131   : > { %v642_v27 = vpack.c.bf16 %v609_v20, %v609_v20  ;;  %v857_v7 = vsel %vm773_vm3, %v2818_v28, %v856_v42 }
 0x133   : > { %1223 = vrot.lane.b32.xlu2 %v1210_v5, %s2421_s7  ;;  %676 = vst.msk [vmem:[#allocation2 + $0x80] sm:$0xf] %vm643_vm2, %v642_v27  ;;  %v575_v5 = vpop.f32.mrf.mxu3  ;;  %v1097_v27 = vshll.u32 %v2870_v49, 16 }
 0x134   : > { %v1101_v5 = vshrl.u32 %v2870_v49, 16 }
 0x135   : > { %v2959_v62 = vpop.permute.xlu2 %1132  ;;  %1329 = vrot.lane.b32.xlu1 %v1264_v14, %s2423_s9  ;;  %1327 = vrot.lane.b32.xlu0 %v1260_v21, %s2423_s9  ;;  %v1089_v14 = vshll.u32 %v2790_v32, 16  ;;  %v2993_v21 = vld [vmem:[#allocation2 + $0x5c] sm:$0xff]  }
 0x136   : > { %v1283_v0 = vshrl.u32 %v2993_v21, 16  ;;  %v1286_v28 = vshll.u32 %v2993_v21, 16 }
 0x137   : > { %v3002_v30 = vrot.slane %v1089_v14, 1  ;;  %v3057_v14 = vld [vmem:[#allocation2 + $0x64] sm:$0xff]  }
 0x138   : > { %v1285_v50 = vrot.slane %v1283_v0, 1  ;;  %v1288_v40 = vrot.slane %v1286_v28, 2  ;;  %v1213_v0 = vrot.slane %v2993_v21, 1 }
 0x13a   : > { %v716_v54 = vld [vmem:[#allocation2 + $0x80] sm:$0x3] }
 0x13b   : > { %1040 = vrot.lane.b32.xlu2 %v1021_v1, %s2419_s30  ;;  %v1092_v1 = vsel %vm773_vm3, %v2767_v58, %v3002_v30  ;;  %v1165_v58 = vsel %vm1010_vm4, %v1162_v16, %v1164_v41  ;;  %v858_v41 = vshrl.u32 %v772_v17, 16  ;;  %v3053_v17 = vrot.slane %v1097_v27, 1 }
 0x13d   : > { %v2980_v19 = vpop.permute.xlu2 %875  ;;  %1188 = vrot.lane.b32.xlu1 %v1169_v47, %s2420_s6  ;;  %1182 = vrot.lane.b32.xlu0 %v2739_v29, %s2420_s6 }
 0x13e   : > { %v1365_v3 = vsel %vm1349_vm7, %v2575_v4, %v2980_v19 }
 0x143   : > { %1231 = vrot.lane.b32.xlu2 %v2840_v45, %s2421_s7  ;;  %v976_v45 = vor.u32 %v974_v10, %v2805_v26  ;;  %v3019_v26 = vor.u32 %v1288_v40, %v1285_v50  ;;  %v948_v50 = vrot.slane %v946_v6, 1  ;;  %v1214_v40 = vsel %vm1010_vm4, %v1211_v51, %v1213_v0 }
 0x145   : > { %v2995_v29 = vpop.permute.xlu2 %1331  ;;  %1335 = vrot.lane.b32.xlu1 %v1281_v55, %s2423_s9  ;;  %879 = vrot.lane.b32.xlu0 %v857_v7, %s2417_s28  ;;  %v981_v57 = vsel %vm773_vm3, %v976_v45, %v2792_v33  ;;  %v1023_v33 = vsel %vm1010_vm4, %v1020_v61, %v2907_v24  ;;  %v860_v61 = vor.u32 %v858_v41, %v856_v42  ;;  %v3045_v55 = vld [vmem:[#allocation2 + $0x6c] sm:$0xff]  }
 0x146   : > { %v1103_v45 = vor.u32 %v1101_v5, %v3053_v17  ;;  %v1304_v27 = vshll.u32 %v3045_v55, 16  ;;  %v1292_v5 = vshrl.u32 %v3057_v14, 16 }
 0x147   : > { %v862_v23 = vpop.permute.xlu0 %861 }
 0x148   : > { %v1351_v12 = vsel %vm1349_vm7, %v2569_v60, %v862_v23 }
 0x14b   : > { %1003 = vrot.lane.b32.xlu2 %v981_v57, %s2422_s8 }
 0x14d   : > { %v3012_v47 = vpop.permute.xlu2 %1134  ;;  %871 = vrot.lane.b32.xlu1 %v2920_v63, %s2417_s28  ;;  %1138 = vrot.lane.b32.xlu0 %v1092_v1, %s2418_s29  ;;  %v1033_v22 = vpop.permute.xlu1 %1032  ;;  %v1290_v63 = vsel %vm1248_vm5, %v1280_v48, %v3019_v26  ;;  %v1105_v48 = vshll.u32 %v2963_v37, 16  ;;  %v1215_v1 = vrot.slane %v3057_v14, 1 }
 0x14f   : > { %v3017_v10 = vpop.permute.xlu0 %1178  ;;  %v3055_v42 = vrot.slane %v1105_v48, 1 }
 0x151   : > { %v1108_v57 = vsel %vm773_vm3, %v1103_v45, %v3055_v42 }
 0x153   : > { %1184 = vrot.lane.b32.xlu2 %v1165_v58, %s2420_s6  ;;  %v942_v58 = vshrl.u32 %v2909_v52, 16 }
 0x155   : > { %v988_v25 = vpop.permute.xlu2 %987  ;;  %1042 = vrot.lane.b32.xlu1 %v1023_v33, %s2419_s30  ;;  %1337 = vrot.lane.b32.xlu0 %v1290_v63, %s2423_s9  ;;  %v3033_v46 = vpop.permute.xlu1 %1227  ;;  %v2144_v33 = vld [vmem:[#allocation2 + $0x70] sm:$0xff]  }
 0x156   : > { %v2126_v19 = vunpack.c.h.b16 %v2144_v33 }
 0x157   : > { %v986_v16 = vpop.permute.xlu0 %985 }
 0x158   : > { %v1375_v24 = vsel %vm1373_vm6, %v1351_v12, %v986_v16  ;;  %v952_v12 = vor.u32 %v950_v56, %v948_v50 }
 0x159   : > { %v3039_v20 = vsel %vm1396_vm8, %v1375_v24, %v1033_v22  ;;  %v1170_v24 = vrot.slane %v2144_v33, 1 }
 0x15a   : > { %v957_v45 = vsel %vm773_vm3, %v952_v12, %v2683_v44  ;;  %v2065_v44 = vld [vmem:[%s3417_s3 + $0x30] sm:$0xff] }
 0x15b   : > { %881 = vrot.lane.b32.xlu2 %v860_v61, %s2417_s28  ;;  %v1301_v61 = vshrl.u32 %v3045_v55, 16  ;;  %1591 = vmatpush.bf16.msra.mxu1 %v2065_v44 }
 0x15c   : > { %2229 = vmatpush.bf16.msrb.mxu3 %v2065_v44  ;;  %v1246_v44 = vunpack.c.l.b16 %v716_v54 }
 0x15d   : > { %v3047_v7 = vpop.permute.xlu2 %865  ;;  %1050 = vrot.lane.b32.xlu1 %v2798_v36, %s2419_s30  ;;  %873 = vrot.lane.b32.xlu0 %v2941_v39, %s2417_s28  ;;  %v864_v60 = vpop.permute.xlu1 %863  ;;  %v1217_v36 = vrot.slane %v3045_v55, 1  ;;  %v711_v39 = vld [vmem:[#allocation2 + $0x7c] sm:$0x1]  ;;  %v2061_v55 = vld [vmem:[%s3417_s3 + $0x10] sm:$0xff] }
 0x15e   : > { %v1353_v49 = vsel %vm1349_vm7, %v2578_v8, %v864_v60  ;;  %v3071_v8 = vld [vmem:[#allocation2 + $0x78] sm:$0xff]   ;;  %v1073_v6 = vunpack.c.l.b16 %v711_v39  ;;  %v1295_v60 = vshll.u32 %v3057_v14, 16  ;;  %v1306_v39 = vrot.slane %v1304_v27, 2 }
 0x15f   : > { %v1047_v23 = vpop.permute.xlu0 %1046  ;;  %v1377_v28 = vsel %vm1373_vm6, %v1353_v49, %v988_v25  ;;  %v1218_v22 = vsel %vm1010_vm4, %v1215_v1, %v1217_v36  ;;  %v944_v25 = vor.u32 %v942_v58, %v2933_v53  ;;  %v2129_v52 = vunpack.c.l.b16 %v3071_v8 }
 0x160   : > { %v1113_v49 = vshll.u32 %v2144_v33, 16 }
 0x161   : > { %v3101_v4 = vpack.c.b16 %v1073_v6, %v2129_v52  ;;  %v949_v53 = vsel %vm773_vm3, %v944_v25, %v948_v50 }
 0x163   : > { %1142 = vrot.lane.b32.xlu2 %v1108_v57, %s2418_s29  ;;  %v1117_v57 = vshrl.u32 %v2144_v33, 16  ;;  %v1121_v50 = vshll.u32 %v3101_v4, 16  ;;  %v1172_v6 = vrot.slane %v3101_v4, 1  ;;  %v1297_v33 = vrot.slane %v1295_v60, 2 }
 0x165   : > { %v3084_v63 = vpop.permute.xlu2 %1048  ;;  %1233 = vrot.lane.b32.xlu1 %v1214_v40, %s2421_s7  ;;  %1237 = vrot.lane.b32.xlu0 %v1218_v22, %s2421_s7  ;;  %v1000_v51 = vpop.permute.xlu1 %999  ;;  %v3119_v40 = vpack.c.b16 %v2129_v52, %v2126_v19  ;;  %v3133_v52 = vrot.slane %v1121_v50, 1  ;;  %v1173_v27 = vsel %vm1010_vm4, %v1170_v24, %v1172_v6  ;;  %v2130_v50 = vunpack.c.h.b16 %v3071_v8 }
 0x166   : > { %v1389_v16 = vsel %vm1373_vm6, %v1365_v3, %v1000_v51  ;;  %v1115_v3 = vrot.slane %v1113_v49, 1 }
 0x167   : > { %v1035_v41 = vpop.permute.xlu0 %1034  ;;  %v3107_v56 = vsel %vm1396_vm8, %v1389_v16, %v1047_v23  ;;  %v1171_v23 = vsel %vm1010_vm4, %v1168_v31, %v1170_v24  ;;  %v1294_v31 = vrot.slane %v1292_v5, 1  ;;  %v1310_v16 = vshrl.u32 %v3119_v40, 16  ;;  %v715_v24 = vld [vmem:[#allocation2 + $0x80] sm:$0x1] }
 0x168   : > { %v3099_v48 = vsel %vm1396_vm8, %v1377_v28, %v1035_v41  ;;  %v1303_v28 = vrot.slane %v1301_v61, 1  ;;  %v1119_v12 = vor.u32 %v1117_v57, %v1115_v3  ;;  %v1313_v41 = vshll.u32 %v3119_v40, 16  ;;  %v2064_v61 = vld [vmem:[%s3417_s3 + $0x28] sm:$0xff] }
 0x169   : > { %v3143_v19 = vor.u32 %v1297_v33, %v1294_v31  ;;  %1592 = vmatpush.bf16.msra.mxu1 %v2064_v61  ;;  %v1312_v60 = vrot.slane %v1310_v16, 1  ;;  %2230 = vmatpush.bf16.msrb.mxu3 %v2064_v61  ;;  %v1109_v57 = vshrl.u32 %v2963_v37, 16  ;;  %v1355_v31 = vsel %vm1349_vm7, %v2639_v2, %v3047_v7 }
 0x16a   : > { %v1307_v25 = vor.u32 %v1306_v39, %v1303_v28  ;;  %v1124_v5 = vsel %vm773_vm3, %v1119_v12, %v3133_v52  ;;  %v1315_v49 = vrot.slane %v1313_v41, 2  ;;  %v2063_v28 = vld [vmem:[%s3417_s3 + $0x20] sm:$0xff]  ;;  %v1201_v41 = vunpack.c.l.b16 %v715_v24 }
 0x16b   : > { %995 = vrot.lane.b32.xlu2 %v949_v53, %s2422_s8  ;;  %v1111_v8 = vor.u32 %v1109_v57, %v3055_v42  ;;  %v1247_v61 = vpack.c.b16 %v1246_v44, %v2130_v50 }
 0x16c   : > { %v1308_v53 = vsel %vm1248_vm5, %v3143_v19, %v1307_v25  ;;  %v1316_v16 = vor.u32 %v1315_v49, %v1312_v60  ;;  %v3175_v54 = vpack.c.b16 %v1201_v41, %v2130_v50 }
 0x16d   : > { %v3121_v22 = vpop.permute.xlu2 %1333  ;;  %997 = vrot.lane.b32.xlu1 %v957_v45, %s2422_s8  ;;  %1190 = vrot.lane.b32.xlu0 %v1171_v23, %s2420_s6  ;;  %v3128_v58 = vpop.permute.xlu1 %1180  ;;  %v1219_v23 = vrot.slane %v3119_v40, 1  ;;  %v2062_v40 = vld [vmem:[%s3417_s3 + $0x18] sm:$0xff]  ;;  %v1116_v2 = vsel %vm773_vm3, %v1111_v8, %v1115_v3  ;;  %v1322_v3 = vshll.u32 %v1247_v61, 16 }
 0x16e   : > { %1593 = vmatpush.bf16.msra.mxu1 %v2063_v28  ;;  %2231 = vmatpush.bf16.msrb.mxu3 %v2063_v28  ;;  %v1317_v7 = vsel %vm1248_vm5, %v1307_v25, %v1316_v16  ;;  %v2374_v25 = vld [vmem:[#allocation2 + $0x40] sm:$0xff]   ;;  %v1221_v24 = vrot.slane %v3175_v54, 1  ;;  %v2060_v28 = vld [vmem:[%s3417_s3 + $0x8] sm:$0xff] }
 0x16f   : > { %v3131_v51 = vpop.permute.xlu0 %1229  ;;  %v1220_v37 = vsel %vm1010_vm4, %v1217_v36, %v1219_v23  ;;  %v1319_v36 = vshrl.u32 %v1247_v61, 16  ;;  %v1324_v44 = vrot.slane %v1322_v3, 2 }
 0x171   : > { %v1321_v50 = vrot.slane %v1319_v36, 1 }
 0x172   : > { %1594 = vmatpush.bf16.msra.mxu1 %v2062_v40  ;;  %2232 = vmatpush.bf16.msrb.mxu3 %v2062_v40 }
 0x173   : > { %1192 = vrot.lane.b32.xlu2 %v1173_v27, %s2420_s6  ;;  %v1093_v27 = vshrl.u32 %v2790_v32, 16 }
 0x175   : > { %v3150_v45 = vpop.permute.xlu2 %869  ;;  %1341 = vrot.lane.b32.xlu1 %v1308_v53, %s2423_s9  ;;  %1146 = vrot.lane.b32.xlu0 %v1124_v5, %s2418_s29  ;;  %v878_v39 = vpop.permute.xlu1 %877  ;;  %v1095_v49 = vor.u32 %v1093_v27, %v3002_v30  ;;  %v1222_v30 = vsel %vm1010_vm4, %v1219_v23, %v1221_v24 }
 0x176   : > { %v1367_v32 = vsel %vm1349_vm7, %v2374_v25, %v878_v39  ;;  %1595 = vmatpush.bf16.msra.mxu1 %v2061_v55  ;;  %2233 = vmatpush.bf16.msrb.mxu3 %v2061_v55 }
 0x177   : > { %v990_v33 = vpop.permute.xlu0 %989  ;;  %v1100_v39 = vsel %vm773_vm3, %v1095_v49, %v3053_v17  ;;  %v2059_v17 = vld [vmem:[%s3417_s3] sm:$0xff] }
 0x178   : > { %v1379_v12 = vsel %vm1373_vm6, %v1355_v31, %v990_v33  ;;  %v1325_v33 = vor.u32 %v1324_v44, %v1321_v50 }
 0x17a   : > { %1596 = vmatpush.bf16.msra.mxu1 %v2060_v28  ;;  %2234 = vmatpush.bf16.msrb.mxu3 %v2060_v28  ;;  %v2375_v28 = vld [vmem:[#allocation2 + $0x48] sm:$0xff]  }
 0x17b   : > { %1239 = vrot.lane.b32.xlu2 %v1220_v37, %s2421_s7  ;;  %v1326_v37 = vsel %vm1248_vm5, %v1316_v16, %v1325_v33 }
 0x17d   : > { %v3177_v53 = vpop.permute.xlu2 %1174  ;;  %1144 = vrot.lane.b32.xlu1 %v1116_v2, %s2418_s29  ;;  %1343 = vrot.lane.b32.xlu0 %v1317_v7, %s2423_s9  ;;  %v3184_v42 = vpop.permute.xlu1 %1136 }
 0x17e   : > { %1597 = vmatpush.bf16.msra.mxu1 %v2059_v17  ;;  %2235 = vmatpush.bf16.msrb.mxu3 %v2059_v17 }
 0x17f   : > { %v1002_v5 = vpop.permute.xlu0 %1001 }
 0x180   : > { %v1391_v60 = vsel %vm1373_vm6, %v1367_v32, %v1002_v5 }
 0x181   : > { %v3195_v57 = vsel %vm1396_vm8, %v1391_v60, %v3084_v63 }
 0x183   : > { %1140 = vrot.lane.b32.xlu2 %v1100_v39, %s2418_s29 }
 0x185   : > { %v3201_v31 = vpop.permute.xlu2 %1176  ;;  %1241 = vrot.lane.b32.xlu1 %v1222_v30, %s2421_s7  ;;  %1044 = vrot.lane.b32.xlu0 %v2917_v59, %s2419_s30  ;;  %v1037_v63 = vpop.permute.xlu1 %1036 }
 0x186   : > { %v1402_v41 = vsel %vm1396_vm8, %v1379_v12, %v1037_v63 }
 0x187   : > { %v868_v40 = vpop.permute.xlu0 %867  ;;  %v1425_v23 = vsel %vm1419_vm9, %v1402_v41, %v2959_v62  ;;  %v1125_v62 = vshrl.u32 %v3101_v4, 16 }
 0x188   : > { %v1448_v59 = vsel %vm1442_vm10, %v1425_v23, %v3017_v10  ;;  %v1357_v10 = vsel %vm1349_vm7, %v2726_v18, %v868_v40  ;;  %v1216_v18 = vsel %vm1010_vm4, %v1213_v0, %v1215_v1 }
 0x189   : > { %v1471_v8 = vsel %vm1465_vm11, %v1448_v59, %v3033_v46 }
 0x18a   : > { %v1496_v12 = vsel %vm1488_vm12, %v1471_v8, %v2995_v29 }
 0x18b   : > { %1345 = vrot.lane.b32.xlu2 %v1326_v37, %s2423_s9 }
 0x18d   : > { %v1224_v61 = vpop.permute.xlu2 %1223  ;;  %1005 = vrot.lane.b32.xlu1 %v2808_v38, %s2422_s8  ;;  %1052 = vrot.lane.b32.xlu0 %v1030_v34, %s2419_s30  ;;  %v992_v16 = vpop.permute.xlu1 %991  ;;  %v1127_v38 = vor.u32 %v1125_v62, %v3133_v52 }
 0x18e   : > { %v1381_v46 = vsel %vm1373_vm6, %v1357_v10, %v992_v16 }
 0x18f   : > { %v1039_v2 = vpop.permute.xlu0 %1038 }
 0x190   : > { %v1404_v7 = vsel %vm1396_vm8, %v1381_v46, %v1039_v2 }
 0x191   : > { %v1427_v29 = vsel %vm1419_vm9, %v1404_v7, %v3012_v47 }
 0x192   : > { %v1450_v9 = vsel %vm1442_vm10, %v1427_v29, %v3128_v58 }
 0x193   : > { %1148 = vrot.lane.b32.xlu2 %v1127_v38, %s2418_s29  ;;  %v1473_v34 = vsel %vm1465_vm11, %v1450_v9, %v3131_v51  ;;  %v1299_v51 = vsel %vm1248_vm5, %v3019_v26, %v3143_v19 }
 0x194   : > { %v1499_v27 = vsel %vm1488_vm12, %v1473_v34, %v3121_v22 }
 0x195   : > { %v1041_v47 = vpop.permute.xlu2 %1040  ;;  %1186 = vrot.lane.b32.xlu1 %v2885_v35, %s2420_s6  ;;  %1235 = vrot.lane.b32.xlu0 %v1216_v18, %s2421_s7  ;;  %v1359_v35 = vsel %vm1349_vm7, %v2822_v11, %v3150_v45 }
 0x197   : > { %v1129_v58 = vpop.permute.xlu1 %1128  ;;  %v1226_v52 = vpop.permute.xlu0 %1225 }
 0x198   : > { %v1421_v26 = vsel %vm1419_vm9, %v3039_v20, %v1129_v58 }
 0x199   : > { %v1444_v4 = vsel %vm1442_vm10, %v1421_v26, %v3177_v53  ;;  %v769_v53 = vpack.c.b16 %v2722_v15, %v2722_v15 }
 0x19a   : > { %v1467_v45 = vsel %vm1465_vm11, %v1444_v4, %v1224_v61 }
 0x19b   : > { %1339 = vrot.lane.b32.xlu2 %v1299_v51, %s2423_s9 }
 0x19d   : > { %v1232_v21 = vpop.permute.xlu2 %1231  ;;  %1194 = vrot.lane.b32.xlu1 %v1172_v6, %s2420_s6  ;;  %1243 = vrot.lane.b32.xlu0 %v1221_v24, %s2421_s7  ;;  %s2238_s6 = smul.u32 21, %s3433_s18 }
 0x19e   : > { %s2239_s7 = smul.u32 42, %s3431_s19 }
 0x19f   : > { %v1131_v14 = vpop.permute.xlu1 %1130  ;;  %v994_v0 = vpop.permute.xlu0 %993 }
 0x1a0   : > { %v1383_v1 = vsel %vm1373_vm6, %v1359_v35, %v994_v0  ;;  %v1423_v25 = vsel %vm1419_vm9, %v3099_v48, %v1131_v14  ;;  %s258_s8 = sadd.s32 %s2239_s7, %s2238_s6 }
 0x1a1   : > { %v1406_v22 = vsel %vm1396_vm8, %v1383_v1, %v1041_v47 }
 0x1a2   : > { %v1429_v19 = vsel %vm1419_vm9, %v1406_v22, %v3184_v42  ;;  %v1446_v42 = vsel %vm1442_vm10, %v1423_v25, %v3201_v31 }
 0x1a3   : > { %v1469_v24 = vsel %vm1465_vm11, %v1446_v42, %v1226_v52 }
 0x1a5   : > { %v1004_v6 = vpop.permute.xlu2 %1003  ;;  %1347 = vrot.lane.b32.xlu1 %v1325_v33, %s2423_s9  ;;  %s1902_s9 = sshll.u32 %s258_s8, 2 }
 0x1a6   : > { %s3337_s18 = scalar_lea.vmem %s3419_s5, %s1902_s9 }
 0x1a7   : > { %v1330_v54 = vpop.permute.xlu1 %1329  ;;  %v1328_v11 = vpop.permute.xlu0 %1327 }
 0x1a8   : > { %v1490_v55 = vsel %vm1488_vm12, %v1467_v45, %v1328_v11  ;;  %v1493_v50 = vsel %vm1488_vm12, %v1469_v24, %v1330_v54 }
 0x1a9   : > { %1598 = vmatmul.bf16.vlgmr.msra.gmra.mxu1 %v1490_v55 }
 0x1ad   : > { %v1185_v36 = vpop.permute.xlu2 %1184 }
 0x1af   : > { %v1189_v20 = vpop.permute.xlu1 %1188  ;;  %v1183_v3 = vpop.permute.xlu0 %1182 }
 0x1b0   : > { %v1452_v10 = vsel %vm1442_vm10, %v1429_v19, %v1183_v3 }
 0x1b1   : > { %v1475_v7 = vsel %vm1465_vm11, %v1452_v10, %v1232_v21 }
 0x1b5   : > { %v882_v32 = vpop.permute.xlu2 %881 }
 0x1b6   : > { %v3277_v5 = vsel %vm1349_vm7, %v769_v53, %v882_v32 }
 0x1b7   : > { %v1336_v60 = vpop.permute.xlu1 %1335  ;;  %v880_v49 = vpop.permute.xlu0 %879 }
 0x1b8   : > { %v1369_v39 = vsel %vm1349_vm7, %v2375_v28, %v880_v49  ;;  %v1502_v29 = vsel %vm1488_vm12, %v1475_v7, %v1336_v60 }
 0x1b9   : > { %1603 = vmatmul.bf16.gmra.mxu1 %v1493_v50  ;;  %v1393_v48 = vsel %vm1373_vm6, %v1369_v39, %v1004_v6 }
 0x1bd   : > { %v1143_v31 = vpop.permute.xlu2 %1142 }
 0x1be   : > { %v1435_v62 = vsel %vm1419_vm9, %v3107_v56, %v1143_v31 }
 0x1bf   : > { %v872_v44 = vpop.permute.xlu1 %871  ;;  %v1139_v30 = vpop.permute.xlu0 %1138  ;;  %v1458_v16 = vsel %vm1442_vm10, %v1435_v62, %v1189_v20 }
 0x1c0   : > { %v1361_v9 = vsel %vm1349_vm7, %v2848_v43, %v872_v44 }
 0x1c5   : > { %v996_v63 = vpop.permute.xlu2 %995 }
 0x1c6   : > { %v1385_v34 = vsel %vm1373_vm6, %v1361_v9, %v996_v63 }
 0x1c7   : > { %v1043_v15 = vpop.permute.xlu1 %1042  ;;  %v1338_v17 = vpop.permute.xlu0 %1337 }
 0x1c8   : > { %v1408_v18 = vsel %vm1396_vm8, %v1385_v34, %v1043_v15 }
 0x1c9   : > { %1608 = vmatmul.bf16.gmra.mxu1 %v1496_v12  ;;  %v1431_v52 = vsel %vm1419_vm9, %v1408_v18, %v1139_v30 }
 0x1ca   : > { %v1454_v21 = vsel %vm1442_vm10, %v1431_v52, %v1185_v36 }
 0x1cd   : > { %v1193_v40 = vpop.permute.xlu2 %1192 }
 0x1cf   : > { %v1051_v33 = vpop.permute.xlu1 %1050  ;;  %v874_v41 = vpop.permute.xlu0 %873 }
 0x1d0   : > { %v1416_v6 = vsel %vm1396_vm8, %v1393_v48, %v1051_v33  ;;  %v1363_v11 = vsel %vm1349_vm7, %v2897_v13, %v874_v41 }
 0x1d5   : > { %v1240_v61 = vpop.permute.xlu2 %1239 }
 0x1d7   : > { %v1234_v23 = vpop.permute.xlu1 %1233  ;;  %v1238_v59 = vpop.permute.xlu0 %1237 }
 0x1d8   : > { %v1481_v46 = vsel %vm1465_vm11, %v1458_v16, %v1238_v59  ;;  %v1477_v14 = vsel %vm1465_vm11, %v1454_v21, %v1234_v23 }
 0x1d9   : > { %1613 = vmatmul.bf16.gmra.mxu1 %v1499_v27  ;;  %v1505_v26 = vsel %vm1488_vm12, %v1477_v14, %v1338_v17 }
 0x1dd   : > { %v1141_v56 = vpop.permute.xlu2 %1140 }
 0x1df   : > { %v998_v37 = vpop.permute.xlu1 %997  ;;  %v1191_v8 = vpop.permute.xlu0 %1190 }
 0x1e0   : > { %v1387_v45 = vsel %vm1373_vm6, %v1363_v11, %v998_v37 }
 0x1e5   : > { %v1346_v35 = vpop.permute.xlu2 %1345 }
 0x1e7   : > { %v1342_v12 = vpop.permute.xlu1 %1341  ;;  %v1147_v2 = vpop.permute.xlu0 %1146 }
 0x1e8   : > { %v1511_v38 = vsel %vm1488_vm12, %v1481_v46, %v1342_v12  ;;  %v1439_v54 = vsel %vm1419_vm9, %v1416_v6, %v1147_v2 }
 0x1e9   : > { %1618 = vmatmul.bf16.gmra.mxu1 %v1502_v29  ;;  %1633 = vmatmul.bf16.vlgmr.msrb.gmra.mxu3 %v1511_v38  ;;  %v1462_v55 = vsel %vm1442_vm10, %v1439_v54, %v1193_v40 }
 0x1ef   : > { %v1145_v27 = vpop.permute.xlu1 %1144  ;;  %v1344_v47 = vpop.permute.xlu0 %1343 }
 0x1f0   : > { %v1437_v58 = vsel %vm1419_vm9, %v3195_v57, %v1145_v27  ;;  %v1149_v57 = vpop.permute.xlu2 %1148 }
 0x1f1   : > { %v1460_v51 = vsel %vm1442_vm10, %v1437_v58, %v1191_v8 }
 0x1f2   : > { %v1483_v43 = vsel %vm1465_vm11, %v1460_v51, %v1240_v61 }
 0x1f3   : > { %v1514_v22 = vsel %vm1488_vm12, %v1483_v43, %v1344_v47 }
 0x1f7   : > { %v1242_v0 = vpop.permute.xlu1 %1241  ;;  %v1045_v1 = vpop.permute.xlu0 %1044 }
 0x1f8   : > { %v1410_v36 = vsel %vm1396_vm8, %v1387_v45, %v1045_v1  ;;  %v1485_v20 = vsel %vm1465_vm11, %v1462_v55, %v1242_v0  ;;  %v1340_v60 = vpop.permute.xlu2 %1339 }
 0x1f9   : > { %1623 = vmatmul.bf16.gmra.mxu1 %v1505_v26  ;;  %1638 = vmatmul.bf16.gmra.mxu3 %v1514_v22  ;;  %v1433_v25 = vsel %vm1419_vm9, %v1410_v36, %v1141_v56  ;;  %v1517_v32 = vsel %vm1488_vm12, %v1485_v20, %v1346_v35 }
 0x1ff   : > { %v1006_v19 = vpop.permute.xlu1 %1005  ;;  %v1053_v4 = vpop.permute.xlu0 %1052 }
 0x200   : > { %v1395_v24 = vsel %vm1373_vm6, %v3277_v5, %v1006_v19  ;;  %v3327_v5 = vld [vmem:[%s3418_s4] ss:$0 sm:$0xff] }
 0x201   : > { %v1418_v39 = vsel %vm1396_vm8, %v1395_v24, %v1053_v4 }
 0x202   : > { %v1441_v50 = vsel %vm1419_vm9, %v1418_v39, %v1149_v57 }
 0x207   : > { %v1187_v3 = vpop.permute.xlu1 %1186  ;;  %v1236_v42 = vpop.permute.xlu0 %1235 }
 0x208   : > { %v1456_v53 = vsel %vm1442_vm10, %v1433_v25, %v1187_v3 }
 0x209   : > { %v1479_v49 = vsel %vm1465_vm11, %v1456_v53, %v1236_v42  ;;  %1643 = vmatmul.bf16.gmra.mxu3 %v1517_v32 }
 0x20a   : > { %v1508_v13 = vsel %vm1488_vm12, %v1479_v49, %v1340_v60 }
 0x20b   : > { %1628 = vmatmul.bf16.gmra.mxu1 %v1508_v13 }
 0x20f   : > { %v1195_v28 = vpop.permute.xlu1 %1194  ;;  %v1244_v44 = vpop.permute.xlu0 %1243 }
 0x210   : > { %v1464_v48 = vsel %vm1442_vm10, %v1441_v50, %v1195_v28 }
 0x211   : > { %v1487_v30 = vsel %vm1465_vm11, %v1464_v48, %v1244_v44 }
 0x217   : > { %v1348_v31 = vpop.permute.xlu1 %1347 }
 0x218   : > { %v1520_v15 = vsel %vm1488_vm12, %v1487_v30, %v1348_v31 }
 0x219   : > { %1648 = vmatmul.bf16.gmra.mxu3 %v1520_v15 }
 0x226   : > { %v1599_v17 = vpop.f32.mrf.mxu1 }
 0x227   : > { %v1600_v63 = vadd.f32 %v3327_v5, %v1599_v17 }
 0x229   : > { %v1653_v33 = vsub.f32 0.0, %v1600_v63 }
 0x22b   : > { %v1674_v41 = vmul.f32 1.442695, %v1653_v33 }
 0x22d   : > { %2290 = vpow2.f32 %v1674_v41 }
 0x22e   : > { %v1601_v40 = vpop.f32.mrf.mxu1 }
 0x22f   : > { %v1602_v23 = vadd.f32 %v3327_v5, %v1601_v40 }
 0x231   : > { %v1654_v59 = vsub.f32 0.0, %v1602_v23 }
 0x233   : > { %v2291_v37 = vpop.eup %2290  ;;  %v1676_v8 = vmul.f32 1.442695, %v1654_v59 }
 0x234   : > { %v1716_v61 = vadd.f32 1.0, %v2291_v37 }
 0x235   : > { %2292 = vpow2.f32 %v1676_v8 }
 0x236   : > { %2294 = vrcp.f32 %v1716_v61  ;;  %v1604_v62 = vpop.f32.mrf.mxu1 }
 0x237   : > { %v1605_v10 = vadd.f32 %v3327_v5, %v1604_v62 }
 0x239   : > { %v1655_v16 = vsub.f32 0.0, %v1605_v10 }
 0x23b   : > { %v2293_v46 = vpop.eup %2292  ;;  %v1678_v12 = vmul.f32 1.442695, %v1655_v16 }
 0x23c   : > { %v2295_v2 = vpop.eup %2294  ;;  %v1717_v7 = vadd.f32 1.0, %v2293_v46 }
 0x23d   : > { %v1758_v29 = vpack.c.bf16 %v2295_v2, %v2295_v2  ;;  %2296 = vpow2.f32 %v1678_v12 }
 0x23e   : > { %2298 = vrcp.f32 %v1717_v7  ;;  %v1606_v38 = vpop.f32.mrf.mxu1 }
 0x23f   : > { %1780 = vst.msk [vmem:[%s3337_s18] sm:$0xf] %vm1779_vm13, %v1758_v29  ;;  %v1607_v9 = vadd.f32 %v3327_v5, %v1606_v38 }
 0x241   : > { %v1656_v56 = vsub.f32 0.0, %v1607_v9 }
 0x243   : > { %v2297_v34 = vpop.eup %2296  ;;  %v1680_v18 = vmul.f32 1.442695, %v1656_v56 }
 0x244   : > { %v2299_v27 = vpop.eup %2298  ;;  %v1718_v47 = vadd.f32 1.0, %v2297_v34 }
 0x245   : > { %v1759_v58 = vpack.c.bf16 %v2299_v27, %v2299_v27  ;;  %2300 = vpow2.f32 %v1680_v18 }
 0x246   : > { %2302 = vrcp.f32 %v1718_v47  ;;  %v1609_v52 = vpop.f32.mrf.mxu1 }
 0x247   : > { %1781 = vst.msk [vmem:[%s3337_s18 + $0x4] sm:$0xf] %vm1779_vm13, %v1759_v58  ;;  %v1610_v51 = vadd.f32 %v3327_v5, %v1609_v52 }
 0x249   : > { %v1657_v21 = vsub.f32 0.0, %v1610_v51 }
 0x24b   : > { %v2301_v35 = vpop.eup %2300  ;;  %v1682_v14 = vmul.f32 1.442695, %v1657_v21 }
 0x24c   : > { %v2303_v43 = vpop.eup %2302  ;;  %v1719_v0 = vadd.f32 1.0, %v2301_v35 }
 0x24d   : > { %v1760_v1 = vpack.c.bf16 %v2303_v43, %v2303_v43  ;;  %2304 = vpow2.f32 %v1682_v14 }
 0x24e   : > { %2306 = vrcp.f32 %v1719_v0  ;;  %v1611_v26 = vpop.f32.mrf.mxu1 }
 0x24f   : > { %1782 = vst.msk [vmem:[%s3337_s18 + $0x8] sm:$0xf] %vm1779_vm13, %v1760_v1  ;;  %v1612_v22 = vadd.f32 %v3327_v5, %v1611_v26 }
 0x251   : > { %v1658_v57 = vsub.f32 0.0, %v1612_v22 }
 0x253   : > { %v2305_v19 = vpop.eup %2304  ;;  %v1684_v4 = vmul.f32 1.442695, %v1658_v57 }
 0x254   : > { %v2307_v6 = vpop.eup %2306  ;;  %v1720_v54 = vadd.f32 1.0, %v2305_v19 }
 0x255   : > { %v1761_v11 = vpack.c.bf16 %v2307_v6, %v2307_v6  ;;  %2308 = vpow2.f32 %v1684_v4 }
 0x256   : > { %2310 = vrcp.f32 %v1720_v54  ;;  %v1614_v45 = vpop.f32.mrf.mxu1 }
 0x257   : > { %1783 = vst.msk [vmem:[%s3337_s18 + $0xc] sm:$0xf] %vm1779_vm13, %v1761_v11  ;;  %v1615_v55 = vadd.f32 %v3327_v5, %v1614_v45 }
 0x259   : > { %v1659_v36 = vsub.f32 0.0, %v1615_v55 }
 0x25b   : > { %v2309_v20 = vpop.eup %2308  ;;  %v1686_v3 = vmul.f32 1.442695, %v1659_v36 }
 0x25c   : > { %v2311_v25 = vpop.eup %2310  ;;  %v1721_v42 = vadd.f32 1.0, %v2309_v20 }
 0x25d   : > { %v1762_v53 = vpack.c.bf16 %v2311_v25, %v2311_v25  ;;  %2312 = vpow2.f32 %v1686_v3 }
 0x25e   : > { %2314 = vrcp.f32 %v1721_v42  ;;  %v1616_v32 = vpop.f32.mrf.mxu1 }
 0x25f   : > { %1784 = vst.msk [vmem:[%s3337_s18 + $0x10] sm:$0xf] %vm1779_vm13, %v1762_v53  ;;  %v1617_v60 = vadd.f32 %v3327_v5, %v1616_v32 }
 0x261   : > { %v1660_v49 = vsub.f32 0.0, %v1617_v60 }
 0x263   : > { %v2313_v13 = vpop.eup %2312  ;;  %v1688_v24 = vmul.f32 1.442695, %v1660_v49 }
 0x264   : > { %v2315_v28 = vpop.eup %2314  ;;  %v1722_v39 = vadd.f32 1.0, %v2313_v13 }
 0x265   : > { %v1763_v50 = vpack.c.bf16 %v2315_v28, %v2315_v28  ;;  %2316 = vpow2.f32 %v1688_v24 }
 0x266   : > { %2318 = vrcp.f32 %v1722_v39  ;;  %v1619_v48 = vpop.f32.mrf.mxu1 }
 0x267   : > { %1785 = vst.msk [vmem:[%s3337_s18 + $0x14] sm:$0xf] %vm1779_vm13, %v1763_v50  ;;  %v1620_v44 = vadd.f32 %v3327_v5, %v1619_v48 }
 0x269   : > { %v1661_v30 = vsub.f32 0.0, %v1620_v44 }
 0x26b   : > { %v2317_v31 = vpop.eup %2316  ;;  %v1690_v15 = vmul.f32 1.442695, %v1661_v30 }
 0x26c   : > { %v2319_v17 = vpop.eup %2318  ;;  %v1723_v63 = vadd.f32 1.0, %v2317_v31  ;;  %v1634_v33 = vpop.f32.mrf.mxu3 }
 0x26d   : > { %v1764_v41 = vpack.c.bf16 %v2319_v17, %v2319_v17  ;;  %2320 = vpow2.f32 %v1690_v15  ;;  %v1635_v40 = vadd.f32 %v3327_v5, %v1634_v33 }
 0x26e   : > { %2322 = vrcp.f32 %v1723_v63  ;;  %v1621_v23 = vpop.f32.mrf.mxu1 }
 0x26f   : > { %1786 = vst.msk [vmem:[%s3337_s18 + $0x18] sm:$0xf] %vm1779_vm13, %v1764_v41  ;;  %v1667_v59 = vsub.f32 0.0, %v1635_v40  ;;  %v1622_v37 = vadd.f32 %v3327_v5, %v1621_v23 }
 0x271   : > { %v1702_v8 = vmul.f32 1.442695, %v1667_v59  ;;  %v1662_v61 = vsub.f32 0.0, %v1622_v37 }
 0x273   : > { %v2321_v62 = vpop.eup %2320  ;;  %2324 = vpow2.f32 %v1702_v8  ;;  %v1692_v10 = vmul.f32 1.442695, %v1662_v61 }
 0x274   : > { %v2323_v16 = vpop.eup %2322  ;;  %v1724_v46 = vadd.f32 1.0, %v2321_v62  ;;  %v1636_v12 = vpop.f32.mrf.mxu3 }
 0x275   : > { %v1765_v2 = vpack.c.bf16 %v2323_v16, %v2323_v16  ;;  %2326 = vpow2.f32 %v1692_v10  ;;  %v1637_v7 = vadd.f32 %v3327_v5, %v1636_v12 }
 0x276   : > { %2328 = vrcp.f32 %v1724_v46  ;;  %v1624_v29 = vpop.f32.mrf.mxu1 }
 0x277   : > { %1787 = vst.msk [vmem:[%s3337_s18 + $0x1c] sm:$0xf] %vm1779_vm13, %v1765_v2  ;;  %v1668_v38 = vsub.f32 0.0, %v1637_v7  ;;  %v1625_v9 = vadd.f32 %v3327_v5, %v1624_v29 }
 0x279   : > { %v2325_v56 = vpop.eup %2324  ;;  %v1704_v34 = vmul.f32 1.442695, %v1668_v38  ;;  %v1663_v18 = vsub.f32 0.0, %v1625_v9 }
 0x27a   : > { %v1730_v27 = vadd.f32 1.0, %v2325_v56 }
 0x27b   : > { %v2327_v47 = vpop.eup %2326  ;;  %2330 = vpow2.f32 %v1704_v34  ;;  %v1694_v58 = vmul.f32 1.442695, %v1663_v18 }
 0x27c   : > { %v2329_v52 = vpop.eup %2328  ;;  %2332 = vrcp.f32 %v1730_v27  ;;  %v1725_v51 = vadd.f32 1.0, %v2327_v47  ;;  %v1639_v21 = vpop.f32.mrf.mxu3 }
 0x27d   : > { %v1766_v35 = vpack.c.bf16 %v2329_v52, %v2329_v52  ;;  %2334 = vpow2.f32 %v1694_v58  ;;  %v1640_v14 = vadd.f32 %v3327_v5, %v1639_v21 }
 0x27e   : > { %2336 = vrcp.f32 %v1725_v51  ;;  %v1626_v43 = vpop.f32.mrf.mxu1 }
 0x27f   : > { %1788 = vst.msk [vmem:[%s3337_s18 + $0x20] sm:$0xf] %vm1779_vm13, %v1766_v35  ;;  %v1669_v0 = vsub.f32 0.0, %v1640_v14  ;;  %v1627_v1 = vadd.f32 %v3327_v5, %v1626_v43 }
 0x281   : > { %v2331_v26 = vpop.eup %2330  ;;  %v1706_v22 = vmul.f32 1.442695, %v1669_v0  ;;  %v1664_v57 = vsub.f32 0.0, %v1627_v1 }
 0x282   : > { %v2333_v19 = vpop.eup %2332  ;;  %v1731_v4 = vadd.f32 1.0, %v2331_v26 }
 0x283   : > { %v2335_v6 = vpop.eup %2334  ;;  %v1772_v54 = vpack.c.bf16 %v2333_v19, %v2333_v19  ;;  %2338 = vpow2.f32 %v1706_v22  ;;  %v1696_v11 = vmul.f32 1.442695, %v1664_v57 }
 0x284   : > { %v2337_v45 = vpop.eup %2336  ;;  %2340 = vrcp.f32 %v1731_v4  ;;  %v1726_v55 = vadd.f32 1.0, %v2335_v6  ;;  %v1641_v36 = vpop.f32.mrf.mxu3 }
 0x285   : > { %1794 = vst.msk [vmem:[%s3337_s18 + $0x38] sm:$0xf] %vm1779_vm13, %v1772_v54  ;;  %v1767_v20 = vpack.c.bf16 %v2337_v45, %v2337_v45  ;;  %2342 = vpow2.f32 %v1696_v11  ;;  %v1642_v3 = vadd.f32 %v3327_v5, %v1641_v36 }
 0x286   : > { %2344 = vrcp.f32 %v1726_v55 }
 0x287   : > { %1789 = vst.msk [vmem:[%s3337_s18 + $0x24] sm:$0xf] %vm1779_vm13, %v1767_v20  ;;  %v1670_v25 = vsub.f32 0.0, %v1642_v3 }
 0x288   : > { %v1629_v42 = vpop.f32.mrf.mxu1 }
 0x289   : > { %v2339_v53 = vpop.eup %2338  ;;  %v1708_v32 = vmul.f32 1.442695, %v1670_v25  ;;  %v1630_v60 = vadd.f32 %v3327_v5, %v1629_v42 }
 0x28a   : > { %v2341_v49 = vpop.eup %2340  ;;  %v1732_v13 = vadd.f32 1.0, %v2339_v53 }
 0x28b   : > { %v2343_v24 = vpop.eup %2342  ;;  %v1773_v28 = vpack.c.bf16 %v2341_v49, %v2341_v49  ;;  %2346 = vpow2.f32 %v1708_v32  ;;  %v1665_v39 = vsub.f32 0.0, %v1630_v60 }
 0x28c   : > { %v2345_v50 = vpop.eup %2344  ;;  %2348 = vrcp.f32 %v1732_v13  ;;  %v1727_v48 = vadd.f32 1.0, %v2343_v24  ;;  %v1644_v44 = vpop.f32.mrf.mxu3 }
 0x28d   : > { %1795 = vst.msk [vmem:[%s3337_s18 + $0x3c] sm:$0xf] %vm1779_vm13, %v1773_v28  ;;  %v1768_v30 = vpack.c.bf16 %v2345_v50, %v2345_v50  ;;  %v1698_v31 = vmul.f32 1.442695, %v1665_v39  ;;  %v1645_v15 = vadd.f32 %v3327_v5, %v1644_v44 }
 0x28e   : > { %2350 = vrcp.f32 %v1727_v48 }
 0x28f   : > { %1790 = vst.msk [vmem:[%s3337_s18 + $0x28] sm:$0xf] %vm1779_vm13, %v1768_v30  ;;  %2352 = vpow2.f32 %v1698_v31  ;;  %v1671_v17 = vsub.f32 0.0, %v1645_v15 }
 0x290   : > { %v1631_v63 = vpop.f32.mrf.mxu1 }
 0x291   : > { %v2347_v33 = vpop.eup %2346  ;;  %v1710_v41 = vmul.f32 1.442695, %v1671_v17  ;;  %v1632_v40 = vadd.f32 %v3327_v5, %v1631_v63 }
 0x292   : > { %v2349_v23 = vpop.eup %2348  ;;  %v1733_v59 = vadd.f32 1.0, %v2347_v33 }
 0x293   : > { %v1774_v37 = vpack.c.bf16 %v2349_v23, %v2349_v23  ;;  %2354 = vpow2.f32 %v1710_v41  ;;  %v1666_v8 = vsub.f32 0.0, %v1632_v40 }
 0x294   : > { %v2351_v61 = vpop.eup %2350  ;;  %2356 = vrcp.f32 %v1733_v59  ;;  %v1646_v62 = vpop.f32.mrf.mxu3 }
 0x295   : > { %v2353_v10 = vpop.eup %2352  ;;  %1796 = vst.msk [vmem:[%s3337_s18 + $0x40] sm:$0xf] %vm1779_vm13, %v1774_v37  ;;  %v1769_v16 = vpack.c.bf16 %v2351_v61, %v2351_v61  ;;  %v1700_v46 = vmul.f32 1.442695, %v1666_v8  ;;  %v1647_v12 = vadd.f32 %v3327_v5, %v1646_v62 }
 0x296   : > { %v1728_v2 = vadd.f32 1.0, %v2353_v10 }
 0x297   : > { %1791 = vst.msk [vmem:[%s3337_s18 + $0x2c] sm:$0xf] %vm1779_vm13, %v1769_v16  ;;  %2358 = vpow2.f32 %v1700_v46  ;;  %v1672_v7 = vsub.f32 0.0, %v1647_v12 }
 0x298   : > { %2360 = vrcp.f32 %v1728_v2 }
 0x299   : > { %v2355_v29 = vpop.eup %2354  ;;  %v1712_v38 = vmul.f32 1.442695, %v1672_v7 }
 0x29a   : > { %v2357_v9 = vpop.eup %2356  ;;  %v1734_v56 = vadd.f32 1.0, %v2355_v29 }
 0x29b   : > { %v1775_v34 = vpack.c.bf16 %v2357_v9, %v2357_v9  ;;  %2362 = vpow2.f32 %v1712_v38 }
 0x29c   : > { %2364 = vrcp.f32 %v1734_v56  ;;  %v1649_v18 = vpop.f32.mrf.mxu3 }
 0x29d   : > { %v2359_v27 = vpop.eup %2358  ;;  %1797 = vst.msk [vmem:[%s3337_s18 + $0x44] sm:$0xf] %vm1779_vm13, %v1775_v34  ;;  %v1650_v47 = vadd.f32 %v3327_v5, %v1649_v18 }
 0x29e   : > { %v2361_v58 = vpop.eup %2360  ;;  %v1729_v52 = vadd.f32 1.0, %v2359_v27 }
 0x29f   : > { %v1770_v51 = vpack.c.bf16 %v2361_v58, %v2361_v58  ;;  %v1673_v21 = vsub.f32 0.0, %v1650_v47 }
 0x2a0   : > { %2366 = vrcp.f32 %v1729_v52 }
 0x2a1   : > { %v2363_v35 = vpop.eup %2362  ;;  %1792 = vst.msk [vmem:[%s3337_s18 + $0x30] sm:$0xf] %vm1779_vm13, %v1770_v51  ;;  %v1714_v14 = vmul.f32 1.442695, %v1673_v21 }
 0x2a2   : > { %v2365_v43 = vpop.eup %2364  ;;  %v1735_v0 = vadd.f32 1.0, %v2363_v35 }
 0x2a3   : > { %v1776_v1 = vpack.c.bf16 %v2365_v43, %v2365_v43  ;;  %2368 = vpow2.f32 %v1714_v14 }
 0x2a4   : > { %2370 = vrcp.f32 %v1735_v0  ;;  %v1651_v26 = vpop.f32.mrf.mxu3 }
 0x2a5   : > { %1798 = vst.msk [vmem:[%s3337_s18 + $0x48] sm:$0xf] %vm1779_vm13, %v1776_v1 }
 0x2a6   : > { %v2367_v5 = vpop.eup %2366 }
 0x2a7   : > { %v1771_v22 = vpack.c.bf16 %v2367_v5, %v2367_v5 }
 0x2a9   : > { %v2369_v57 = vpop.eup %2368  ;;  %1793 = vst.msk [vmem:[%s3337_s18 + $0x34] sm:$0xf] %vm1779_vm13, %v1771_v22 }
 0x2aa   : > { %v2371_v19 = vpop.eup %2370  ;;  %v1736_v4 = vadd.f32 1.0, %v2369_v57 }
 0x2ab   : > { %v1777_v6 = vpack.c.bf16 %v2371_v19, %v2371_v19 }
 0x2ac   : > { %2372 = vrcp.f32 %v1736_v4 }
 0x2ad   : > { %1799 = vst.msk [vmem:[%s3337_s18 + $0x4c] sm:$0xf] %vm1779_vm13, %v1777_v6 }
 0x2b2   : > { %v2373_v54 = vpop.eup %2372 }
 0x2b3   : > { %v1778_v11 = vpack.c.bf16 %v2373_v54, %v2373_v54 }
 0x2b5   : > { %1800 = vst.msk [vmem:[%s3337_s18 + $0x50] sm:$0xf] %vm1779_vm13, %v1778_v11 }
 0x2b6 PF: > { %s15_s22 = sadd.s32 1, %s2414_s22   ;;  %s3420_s18 = smov %s2406_s20 }
 0x2b7   : > { %p12_p7 = scmp.ge.s32.totalorder %s15_s22, 6   ;;  %s3421_s19 = smov %s2410_s21 }
 0x2b8   : > { %s3422_s20 = smov %s3425_s23  ;;  %s3423_s21 = smov %s3429_s24 }
 0x2b9   :  { %14 = sbr.rel (!%p12_p7) target bundleno = 3 (0x3), region = 70 }

</bundles_post_ra>
